<compile_context>
chip_gen: v7x
topology: tpu7x:2x2x1
jax: 0.10.0
libtpu: 0.0.40
codegen_flags: <defaults>
</compile_context>

<pallas_src>
import jax
import jax.numpy as jnp
from jax.experimental import pallas as pl
from jax.experimental.pallas import tpu as pltpu

EPS = 1e-5
PAD = 128        # lane-dense feature width for in-VMEM intermediates (all widths <= 128)
V_ROWS = 16      # rows 0..7: (g1,be1,...,g4,be4); row 8: b5; rest zero padding


def ann_batch4_kernel(x_ref, w_ref, v_ref, out_ref):
    # x_ref:   (Gblk, B, FIN)   un-padded input activations for Gblk instances
    # w_ref:   (5, PAD, PAD)    bf16, zero-padded [in, out] weights of the 5 linears
    # v_ref:   (V_ROWS, PAD)    f32: BN gamma/beta per layer + final bias
    # out_ref: (Gblk, B, FOUT)  un-padded output
    gblk, b, fin = x_ref.shape
    fout = out_ref.shape[-1]
    m = gblk * b

    # Stack all instances along M for the matmuls; MXU wants bf16 operands.
    h16 = x_ref[...].reshape(m, fin).astype(jnp.bfloat16)

    # Four fused Linear -> BatchNorm(batch stats) -> ReLU blocks (statically unrolled).
    for l in range(4):
        if l == 0:
            w = w_ref[0][:fin, :]                   # [fin, PAD] bf16 (one (16,128) tile)
        else:
            w = w_ref[l]                            # [PAD, PAD] bf16, static index
        g = v_ref[2 * l:2 * l + 1, :]               # [1, PAD] f32
        beta = v_ref[2 * l + 1:2 * l + 2, :]        # [1, PAD] f32

        # Linear on the stacked slab (bias omitted: cancelled by BN mean subtraction).
        y = jnp.dot(h16, w, preferred_element_type=jnp.float32)   # [m, PAD] f32

        # Per-instance batch statistics: reduce over the true batch dim (axis=1).
        # One-pass var = E[y^2] - mean^2 (biased, as in BN training), clamped at 0.
        y3 = y.reshape(gblk, b, PAD)
        mean = jnp.mean(y3, axis=1, keepdims=True)            # [gblk, 1, PAD]
        mean_sq = jnp.mean(y3 * y3, axis=1, keepdims=True)
        var = jnp.maximum(mean_sq - mean * mean, 0.0)

        # Folded BN affine: y_bn = y*s + t, then ReLU.  All f32.
        s = g * jax.lax.rsqrt(var + EPS)                       # rsqrt -> EUP slot
        t = beta - mean * s
        h = jnp.maximum(y3 * s + t, 0.0)                       # [gblk, b, PAD]

        # Padded lanes stay exactly zero (zero-padded weights, gamma, beta), no masking.
        h16 = h.reshape(m, PAD).astype(jnp.bfloat16)

    # Final Linear (with bias), slice to the real output width, store un-padded.
    out_full = jnp.dot(h16, w_ref[4], preferred_element_type=jnp.float32)
    out = (out_full + v_ref[8:9, :])[:, :fout]
    out_ref[...] = out.reshape(gblk, b, fout).astype(out_ref.dtype)


def _pick_gblk(G, B, max_rows_per_step):
    """Largest divisor of G with Gblk*B <= max_rows_per_step and grid >= 2 steps."""
    if G == 1:
        return 1
    cap = max(1, min(G // 2, max_rows_per_step // max(B, 1)))
    for g in range(cap, 0, -1):
        if G % g == 0:
            return g
    return 1


def ann_batch_4_forward(x, w_slab, v_slab, out_size, *, max_rows_per_step=512):
    """x: [G, B, input_size] (or [B, input_size]) float32.
    Returns [G, B, out_size] (or [B, out_size]) float32."""
    squeeze = x.ndim == 2
    if squeeze:
        x = x[None]
    G, B, fin = x.shape
    gblk = _pick_gblk(G, B, max_rows_per_step)
    grid = (G // gblk,)

    out = pl.pallas_call(
        ann_batch4_kernel,
        out_shape=jax.ShapeDtypeStruct((G, B, out_size), jnp.float32),
        grid=grid,
        in_specs=[
            # Gblk instances per step; last two block dims equal the full array dims.
            pl.BlockSpec((gblk, B, fin), lambda g: (g, 0, 0)),
            # Constant index_map -> slabs fetched once, resident across grid steps.
            pl.BlockSpec((5, PAD, PAD), lambda g: (0, 0, 0)),
            pl.BlockSpec((V_ROWS, PAD), lambda g: (0, 0)),
        ],
        out_specs=pl.BlockSpec((gblk, B, out_size), lambda g: (g, 0, 0)),
        compiler_params=pltpu.CompilerParams(
            dimension_semantics=("parallel",)),     # shard grid steps across v7x's 2 TCs
    )(x, w_slab, v_slab)

    return out[0] if squeeze else out


def init_params(key, dims):
    """Per-layer (w[in,out], b[out], gamma[out]|None, beta[out]|None).
    Random gamma/beta/bias so the correctness check is non-trivial."""
    params = []
    for li, (fin, fout) in enumerate(dims):
        key, kw, kb, kg, kbe = jax.random.split(key, 5)
        scale = 1.0 / jnp.sqrt(jnp.float32(fin))
        w = jax.random.uniform(kw, (fin, fout), jnp.float32, -scale, scale)
        b = jax.random.uniform(kb, (fout,), jnp.float32, -scale, scale)
        if li < 4:
            gamma = jax.random.uniform(kg, (fout,), jnp.float32, 0.5, 1.5)
            beta = 0.1 * jax.random.normal(kbe, (fout,), jnp.float32)
        else:
            gamma, beta = None, None
        params.append((w, b, gamma, beta))
    return key, params


def pack_params(params):
    """Pack the small tensors into two zero-padded slabs: bf16 weights + f32 vectors."""
    w_slab = jnp.zeros((5, PAD, PAD), jnp.float32)
    rows = []
    for li, (w, b, g, beta) in enumerate(params):
        fin, fout = w.shape
        w_slab = w_slab.at[li, :fin, :fout].set(w)
        if li < 4:
            rows.append(jnp.pad(g, (0, PAD - fout)))
            rows.append(jnp.pad(beta, (0, PAD - fout)))
            # b1..b4 intentionally NOT packed: exactly cancelled by BN mean subtraction.
    b5 = params[4][1]
    rows.append(jnp.pad(b5, (0, PAD - b5.shape[0])))
    while len(rows) < V_ROWS:
        rows.append(jnp.zeros((PAD,), jnp.float32))
    v_slab = jnp.stack(rows, axis=0)
    return w_slab.astype(jnp.bfloat16), v_slab


def reference_forward(x, params, matmul_dtype=jnp.float32):
    """Pure-JAX reference matching the PyTorch module (biases included in layers 1-4).
    matmul_dtype=bf16 reproduces the kernel's MXU numerics path."""
    def mm(a, w):
        return jnp.dot(a.astype(matmul_dtype), w.astype(matmul_dtype),
                       preferred_element_type=jnp.float32)

    h = x
    for li in range(4):
        w, b, g, beta = params[li]
        y = mm(h, w) + b
        m = jnp.mean(y, axis=0, keepdims=True)
        v = jnp.mean((y - m) ** 2, axis=0, keepdims=True)
        h = jnp.maximum((y - m) * jax.lax.rsqrt(v + EPS) * g + beta, 0.0)
    w5, b5, _, _ = params[4]
    return mm(h, w5) + b5


if __name__ == "__main__":
    # 8 independent instances (each with its own BN batch stats), batch 8 each.
    # -> Gblk = 4 instances per grid step (M = 32 rows stacked), grid = (2,).
    G, B = 8, 8
    input_size, h1, h2, h3, h4, output_size = 16, 32, 64, 32, 16, 8
    dims = [(input_size, h1), (h1, h2), (h2, h3), (h3, h4), (h4, output_size)]

    key = jax.random.PRNGKey(0)
    key, kx = jax.random.split(key)
    x = jax.random.normal(kx, (G, B, input_size), jnp.float32)
    key, params = init_params(key, dims)
    w_slab, v_slab = pack_params(params)

    out = ann_batch_4_forward(x, w_slab, v_slab, output_size)
    out = jax.block_until_ready(out)
    assert out.shape == (G, B, output_size)

    # 1) Numerics-path check: reference with bf16 matmul operands (same math path
    #    as the kernel's MXU matmuls) must match tightly.
    ref_bf16 = jax.vmap(lambda xi: reference_forward(xi, params, jnp.bfloat16))(x)
    assert jnp.allclose(out, ref_bf16, atol=5e-3, rtol=5e-3), "mismatch vs bf16-path reference"

    # 2) Module-semantics sanity check vs the full-f32 reference; the only deviation
    #    is bf16 matmul rounding (mostly re-absorbed by BN), so a coarse bound suffices.
    ref_f32 = jax.vmap(lambda xi: reference_forward(xi, params, jnp.float32))(x)
    assert jnp.allclose(out, ref_f32, atol=1e-1, rtol=1e-1), "mismatch vs f32 reference"

    print("KERNEL_OK")
</pallas_src>

<mosaic_0001>
module attributes {stable_mosaic.version = 11 : i64} {
  func.func @ann_batch4_kernel(%arg0: i32, %arg1: memref<4x8x16xf32, #tpu.memory_space<vmem>>, %arg2: memref<5x128x128xbf16, #tpu.memory_space<vmem>>, %arg3: memref<16x128xf32, #tpu.memory_space<vmem>>, %arg4: memref<4x8x8xf32, #tpu.memory_space<vmem>>) attributes {dimension_semantics = [#tpu.dimension_semantics<parallel>], iteration_bounds = array<i64: 2>, scalar_prefetch = 0 : i64, scratch_operands = 0 : i64, tpu.core_type = #tpu.core_type<tc>, window_params = [{transform_indices = @transform_0, window_bounds = array<i64: 4, 8, 16>}, {pipeline_mode = #tpu.pipeline_mode<synchronous>, transform_indices = @transform_1, window_bounds = array<i64: 5, 128, 128>}, {pipeline_mode = #tpu.pipeline_mode<synchronous>, transform_indices = @transform_2, window_bounds = array<i64: 16, 128>}, {transform_indices = @transform_3, window_bounds = array<i64: 4, 8, 8>}]} {
    %c0 = arith.constant 0 : index
    %c0_0 = arith.constant 0 : index
    %c0_1 = arith.constant 0 : index
    %0 = vector.load %arg1[%c0, %c0_0, %c0_1] : memref<4x8x16xf32, #tpu.memory_space<vmem>>, vector<4x8x16xf32>
    %1 = vector.shape_cast %0 : vector<4x8x16xf32> to vector<32x16xf32>
    %2 = arith.truncf %1 : vector<32x16xf32> to vector<32x16xbf16>
    %c0_2 = arith.constant 0 : index
    %c0_3 = arith.constant 0 : index
    %c0_4 = arith.constant 0 : index
    %3 = vector.load %arg2[%c0_2, %c0_3, %c0_4] : memref<5x128x128xbf16, #tpu.memory_space<vmem>>, vector<1x128x128xbf16>
    %4 = vector.shape_cast %3 : vector<1x128x128xbf16> to vector<128x128xbf16>
    %5 = vector.extract_strided_slice %4 {offsets = [0, 0], sizes = [16, 128], strides = [1, 1]} : vector<128x128xbf16> to vector<16x128xbf16>
    %c0_5 = arith.constant 0 : index
    %c0_6 = arith.constant 0 : index
    %6 = vector.load %arg3[%c0_5, %c0_6] : memref<16x128xf32, #tpu.memory_space<vmem>>, vector<1x128xf32>
    %c1 = arith.constant 1 : index
    %c0_7 = arith.constant 0 : index
    %7 = vector.load %arg3[%c1, %c0_7] : memref<16x128xf32, #tpu.memory_space<vmem>>, vector<1x128xf32>
    %cst = arith.constant dense<0.000000e+00> : vector<32x128xf32>
    %8 = tpu.matmul %2, %5, %cst {dimension_numbers = #tpu.dot_dimension_numbers<[1], [0], [0], [1], [0, 0, 1, 1], [], []>} : vector<32x16xbf16>, vector<16x128xbf16>, vector<32x128xf32> -> vector<32x128xf32>
    %9 = vector.shape_cast %8 : vector<32x128xf32> to vector<4x8x128xf32>
    %cst_8 = arith.constant dense<0.000000e+00> : vector<4x128xf32>
    %10 = vector.multi_reduction <add>, %9, %cst_8 [1] : vector<4x8x128xf32> to vector<4x128xf32>
    %11 = vector.shape_cast %10 : vector<4x128xf32> to vector<4x1x128xf32>
    %cst_9 = arith.constant 8.000000e+00 : f32
    %12 = vector.broadcast %cst_9 : f32 to vector<4x1x128xf32>
    %13 = arith.divf %11, %12 : vector<4x1x128xf32>
    %14 = arith.mulf %9, %9 : vector<4x8x128xf32>
    %cst_10 = arith.constant dense<0.000000e+00> : vector<4x128xf32>
    %15 = vector.multi_reduction <add>, %14, %cst_10 [1] : vector<4x8x128xf32> to vector<4x128xf32>
    %16 = vector.shape_cast %15 : vector<4x128xf32> to vector<4x1x128xf32>
    %cst_11 = arith.constant 8.000000e+00 : f32
    %17 = vector.broadcast %cst_11 : f32 to vector<4x1x128xf32>
    %18 = arith.divf %16, %17 : vector<4x1x128xf32>
    %19 = arith.mulf %13, %13 : vector<4x1x128xf32>
    %20 = arith.subf %18, %19 : vector<4x1x128xf32>
    %cst_12 = arith.constant 0.000000e+00 : f32
    %21 = vector.broadcast %cst_12 : f32 to vector<4x1x128xf32>
    %22 = arith.maximumf %20, %21 : vector<4x1x128xf32>
    %cst_13 = arith.constant 9.99999974E-6 : f32
    %23 = vector.broadcast %cst_13 : f32 to vector<4x1x128xf32>
    %24 = arith.addf %22, %23 : vector<4x1x128xf32>
    %25 = math.rsqrt %24 : vector<4x1x128xf32>
    %26 = vector.shape_cast %6 : vector<1x128xf32> to vector<1x1x128xf32>
    %27 = vector.broadcast %26 : vector<1x1x128xf32> to vector<4x1x128xf32>
    %28 = arith.mulf %27, %25 : vector<4x1x128xf32>
    %29 = arith.mulf %13, %28 : vector<4x1x128xf32>
    %30 = vector.shape_cast %7 : vector<1x128xf32> to vector<1x1x128xf32>
    %31 = vector.broadcast %30 : vector<1x1x128xf32> to vector<4x1x128xf32>
    %32 = arith.subf %31, %29 : vector<4x1x128xf32>
    %33 = vector.broadcast %28 : vector<4x1x128xf32> to vector<4x8x128xf32>
    %34 = arith.mulf %9, %33 : vector<4x8x128xf32>
    %35 = vector.broadcast %32 : vector<4x1x128xf32> to vector<4x8x128xf32>
    %36 = arith.addf %34, %35 : vector<4x8x128xf32>
    %cst_14 = arith.constant 0.000000e+00 : f32
    %37 = vector.broadcast %cst_14 : f32 to vector<4x8x128xf32>
    %38 = arith.maximumf %36, %37 : vector<4x8x128xf32>
    %39 = vector.shape_cast %38 : vector<4x8x128xf32> to vector<32x128xf32>
    %40 = arith.truncf %39 : vector<32x128xf32> to vector<32x128xbf16>
    %c1_15 = arith.constant 1 : index
    %c0_16 = arith.constant 0 : index
    %c0_17 = arith.constant 0 : index
    %41 = vector.load %arg2[%c1_15, %c0_16, %c0_17] : memref<5x128x128xbf16, #tpu.memory_space<vmem>>, vector<1x128x128xbf16>
    %42 = vector.shape_cast %41 : vector<1x128x128xbf16> to vector<128x128xbf16>
    %c2 = arith.constant 2 : index
    %c0_18 = arith.constant 0 : index
    %43 = vector.load %arg3[%c2, %c0_18] : memref<16x128xf32, #tpu.memory_space<vmem>>, vector<1x128xf32>
    %c3 = arith.constant 3 : index
    %c0_19 = arith.constant 0 : index
    %44 = vector.load %arg3[%c3, %c0_19] : memref<16x128xf32, #tpu.memory_space<vmem>>, vector<1x128xf32>
    %cst_20 = arith.constant dense<0.000000e+00> : vector<32x128xf32>
    %45 = tpu.matmul %40, %42, %cst_20 {dimension_numbers = #tpu.dot_dimension_numbers<[1], [0], [0], [1], [0, 0, 1, 1], [], []>} : vector<32x128xbf16>, vector<128x128xbf16>, vector<32x128xf32> -> vector<32x128xf32>
    %46 = vector.shape_cast %45 : vector<32x128xf32> to vector<4x8x128xf32>
    %cst_21 = arith.constant dense<0.000000e+00> : vector<4x128xf32>
    %47 = vector.multi_reduction <add>, %46, %cst_21 [1] : vector<4x8x128xf32> to vector<4x128xf32>
    %48 = vector.shape_cast %47 : vector<4x128xf32> to vector<4x1x128xf32>
    %cst_22 = arith.constant 8.000000e+00 : f32
    %49 = vector.broadcast %cst_22 : f32 to vector<4x1x128xf32>
    %50 = arith.divf %48, %49 : vector<4x1x128xf32>
    %51 = arith.mulf %46, %46 : vector<4x8x128xf32>
    %cst_23 = arith.constant dense<0.000000e+00> : vector<4x128xf32>
    %52 = vector.multi_reduction <add>, %51, %cst_23 [1] : vector<4x8x128xf32> to vector<4x128xf32>
    %53 = vector.shape_cast %52 : vector<4x128xf32> to vector<4x1x128xf32>
    %cst_24 = arith.constant 8.000000e+00 : f32
    %54 = vector.broadcast %cst_24 : f32 to vector<4x1x128xf32>
    %55 = arith.divf %53, %54 : vector<4x1x128xf32>
    %56 = arith.mulf %50, %50 : vector<4x1x128xf32>
    %57 = arith.subf %55, %56 : vector<4x1x128xf32>
    %cst_25 = arith.constant 0.000000e+00 : f32
    %58 = vector.broadcast %cst_25 : f32 to vector<4x1x128xf32>
    %59 = arith.maximumf %57, %58 : vector<4x1x128xf32>
    %cst_26 = arith.constant 9.99999974E-6 : f32
    %60 = vector.broadcast %cst_26 : f32 to vector<4x1x128xf32>
    %61 = arith.addf %59, %60 : vector<4x1x128xf32>
    %62 = math.rsqrt %61 : vector<4x1x128xf32>
    %63 = vector.shape_cast %43 : vector<1x128xf32> to vector<1x1x128xf32>
    %64 = vector.broadcast %63 : vector<1x1x128xf32> to vector<4x1x128xf32>
    %65 = arith.mulf %64, %62 : vector<4x1x128xf32>
    %66 = arith.mulf %50, %65 : vector<4x1x128xf32>
    %67 = vector.shape_cast %44 : vector<1x128xf32> to vector<1x1x128xf32>
    %68 = vector.broadcast %67 : vector<1x1x128xf32> to vector<4x1x128xf32>
    %69 = arith.subf %68, %66 : vector<4x1x128xf32>
    %70 = vector.broadcast %65 : vector<4x1x128xf32> to vector<4x8x128xf32>
    %71 = arith.mulf %46, %70 : vector<4x8x128xf32>
    %72 = vector.broadcast %69 : vector<4x1x128xf32> to vector<4x8x128xf32>
    %73 = arith.addf %71, %72 : vector<4x8x128xf32>
    %cst_27 = arith.constant 0.000000e+00 : f32
    %74 = vector.broadcast %cst_27 : f32 to vector<4x8x128xf32>
    %75 = arith.maximumf %73, %74 : vector<4x8x128xf32>
    %76 = vector.shape_cast %75 : vector<4x8x128xf32> to vector<32x128xf32>
    %77 = arith.truncf %76 : vector<32x128xf32> to vector<32x128xbf16>
    %c2_28 = arith.constant 2 : index
    %c0_29 = arith.constant 0 : index
    %c0_30 = arith.constant 0 : index
    %78 = vector.load %arg2[%c2_28, %c0_29, %c0_30] : memref<5x128x128xbf16, #tpu.memory_space<vmem>>, vector<1x128x128xbf16>
    %79 = vector.shape_cast %78 : vector<1x128x128xbf16> to vector<128x128xbf16>
    %c4 = arith.constant 4 : index
    %c0_31 = arith.constant 0 : index
    %80 = vector.load %arg3[%c4, %c0_31] : memref<16x128xf32, #tpu.memory_space<vmem>>, vector<1x128xf32>
    %c5 = arith.constant 5 : index
    %c0_32 = arith.constant 0 : index
    %81 = vector.load %arg3[%c5, %c0_32] : memref<16x128xf32, #tpu.memory_space<vmem>>, vector<1x128xf32>
    %cst_33 = arith.constant dense<0.000000e+00> : vector<32x128xf32>
    %82 = tpu.matmul %77, %79, %cst_33 {dimension_numbers = #tpu.dot_dimension_numbers<[1], [0], [0], [1], [0, 0, 1, 1], [], []>} : vector<32x128xbf16>, vector<128x128xbf16>, vector<32x128xf32> -> vector<32x128xf32>
    %83 = vector.shape_cast %82 : vector<32x128xf32> to vector<4x8x128xf32>
    %cst_34 = arith.constant dense<0.000000e+00> : vector<4x128xf32>
    %84 = vector.multi_reduction <add>, %83, %cst_34 [1] : vector<4x8x128xf32> to vector<4x128xf32>
    %85 = vector.shape_cast %84 : vector<4x128xf32> to vector<4x1x128xf32>
    %cst_35 = arith.constant 8.000000e+00 : f32
    %86 = vector.broadcast %cst_35 : f32 to vector<4x1x128xf32>
    %87 = arith.divf %85, %86 : vector<4x1x128xf32>
    %88 = arith.mulf %83, %83 : vector<4x8x128xf32>
    %cst_36 = arith.constant dense<0.000000e+00> : vector<4x128xf32>
    %89 = vector.multi_reduction <add>, %88, %cst_36 [1] : vector<4x8x128xf32> to vector<4x128xf32>
    %90 = vector.shape_cast %89 : vector<4x128xf32> to vector<4x1x128xf32>
    %cst_37 = arith.constant 8.000000e+00 : f32
    %91 = vector.broadcast %cst_37 : f32 to vector<4x1x128xf32>
    %92 = arith.divf %90, %91 : vector<4x1x128xf32>
    %93 = arith.mulf %87, %87 : vector<4x1x128xf32>
    %94 = arith.subf %92, %93 : vector<4x1x128xf32>
    %cst_38 = arith.constant 0.000000e+00 : f32
    %95 = vector.broadcast %cst_38 : f32 to vector<4x1x128xf32>
    %96 = arith.maximumf %94, %95 : vector<4x1x128xf32>
    %cst_39 = arith.constant 9.99999974E-6 : f32
    %97 = vector.broadcast %cst_39 : f32 to vector<4x1x128xf32>
    %98 = arith.addf %96, %97 : vector<4x1x128xf32>
    %99 = math.rsqrt %98 : vector<4x1x128xf32>
    %100 = vector.shape_cast %80 : vector<1x128xf32> to vector<1x1x128xf32>
    %101 = vector.broadcast %100 : vector<1x1x128xf32> to vector<4x1x128xf32>
    %102 = arith.mulf %101, %99 : vector<4x1x128xf32>
    %103 = arith.mulf %87, %102 : vector<4x1x128xf32>
    %104 = vector.shape_cast %81 : vector<1x128xf32> to vector<1x1x128xf32>
    %105 = vector.broadcast %104 : vector<1x1x128xf32> to vector<4x1x128xf32>
    %106 = arith.subf %105, %103 : vector<4x1x128xf32>
    %107 = vector.broadcast %102 : vector<4x1x128xf32> to vector<4x8x128xf32>
    %108 = arith.mulf %83, %107 : vector<4x8x128xf32>
    %109 = vector.broadcast %106 : vector<4x1x128xf32> to vector<4x8x128xf32>
    %110 = arith.addf %108, %109 : vector<4x8x128xf32>
    %cst_40 = arith.constant 0.000000e+00 : f32
    %111 = vector.broadcast %cst_40 : f32 to vector<4x8x128xf32>
    %112 = arith.maximumf %110, %111 : vector<4x8x128xf32>
    %113 = vector.shape_cast %112 : vector<4x8x128xf32> to vector<32x128xf32>
    %114 = arith.truncf %113 : vector<32x128xf32> to vector<32x128xbf16>
    %c3_41 = arith.constant 3 : index
    %c0_42 = arith.constant 0 : index
    %c0_43 = arith.constant 0 : index
    %115 = vector.load %arg2[%c3_41, %c0_42, %c0_43] : memref<5x128x128xbf16, #tpu.memory_space<vmem>>, vector<1x128x128xbf16>
    %116 = vector.shape_cast %115 : vector<1x128x128xbf16> to vector<128x128xbf16>
    %c6 = arith.constant 6 : index
    %c0_44 = arith.constant 0 : index
    %117 = vector.load %arg3[%c6, %c0_44] : memref<16x128xf32, #tpu.memory_space<vmem>>, vector<1x128xf32>
    %c7 = arith.constant 7 : index
    %c0_45 = arith.constant 0 : index
    %118 = vector.load %arg3[%c7, %c0_45] : memref<16x128xf32, #tpu.memory_space<vmem>>, vector<1x128xf32>
    %cst_46 = arith.constant dense<0.000000e+00> : vector<32x128xf32>
    %119 = tpu.matmul %114, %116, %cst_46 {dimension_numbers = #tpu.dot_dimension_numbers<[1], [0], [0], [1], [0, 0, 1, 1], [], []>} : vector<32x128xbf16>, vector<128x128xbf16>, vector<32x128xf32> -> vector<32x128xf32>
    %120 = vector.shape_cast %119 : vector<32x128xf32> to vector<4x8x128xf32>
    %cst_47 = arith.constant dense<0.000000e+00> : vector<4x128xf32>
    %121 = vector.multi_reduction <add>, %120, %cst_47 [1] : vector<4x8x128xf32> to vector<4x128xf32>
    %122 = vector.shape_cast %121 : vector<4x128xf32> to vector<4x1x128xf32>
    %cst_48 = arith.constant 8.000000e+00 : f32
    %123 = vector.broadcast %cst_48 : f32 to vector<4x1x128xf32>
    %124 = arith.divf %122, %123 : vector<4x1x128xf32>
    %125 = arith.mulf %120, %120 : vector<4x8x128xf32>
    %cst_49 = arith.constant dense<0.000000e+00> : vector<4x128xf32>
    %126 = vector.multi_reduction <add>, %125, %cst_49 [1] : vector<4x8x128xf32> to vector<4x128xf32>
    %127 = vector.shape_cast %126 : vector<4x128xf32> to vector<4x1x128xf32>
    %cst_50 = arith.constant 8.000000e+00 : f32
    %128 = vector.broadcast %cst_50 : f32 to vector<4x1x128xf32>
    %129 = arith.divf %127, %128 : vector<4x1x128xf32>
    %130 = arith.mulf %124, %124 : vector<4x1x128xf32>
    %131 = arith.subf %129, %130 : vector<4x1x128xf32>
    %cst_51 = arith.constant 0.000000e+00 : f32
    %132 = vector.broadcast %cst_51 : f32 to vector<4x1x128xf32>
    %133 = arith.maximumf %131, %132 : vector<4x1x128xf32>
    %cst_52 = arith.constant 9.99999974E-6 : f32
    %134 = vector.broadcast %cst_52 : f32 to vector<4x1x128xf32>
    %135 = arith.addf %133, %134 : vector<4x1x128xf32>
    %136 = math.rsqrt %135 : vector<4x1x128xf32>
    %137 = vector.shape_cast %117 : vector<1x128xf32> to vector<1x1x128xf32>
    %138 = vector.broadcast %137 : vector<1x1x128xf32> to vector<4x1x128xf32>
    %139 = arith.mulf %138, %136 : vector<4x1x128xf32>
    %140 = arith.mulf %124, %139 : vector<4x1x128xf32>
    %141 = vector.shape_cast %118 : vector<1x128xf32> to vector<1x1x128xf32>
    %142 = vector.broadcast %141 : vector<1x1x128xf32> to vector<4x1x128xf32>
    %143 = arith.subf %142, %140 : vector<4x1x128xf32>
    %144 = vector.broadcast %139 : vector<4x1x128xf32> to vector<4x8x128xf32>
    %145 = arith.mulf %120, %144 : vector<4x8x128xf32>
    %146 = vector.broadcast %143 : vector<4x1x128xf32> to vector<4x8x128xf32>
    %147 = arith.addf %145, %146 : vector<4x8x128xf32>
    %cst_53 = arith.constant 0.000000e+00 : f32
    %148 = vector.broadcast %cst_53 : f32 to vector<4x8x128xf32>
    %149 = arith.maximumf %147, %148 : vector<4x8x128xf32>
    %150 = vector.shape_cast %149 : vector<4x8x128xf32> to vector<32x128xf32>
    %151 = arith.truncf %150 : vector<32x128xf32> to vector<32x128xbf16>
    %c4_54 = arith.constant 4 : index
    %c0_55 = arith.constant 0 : index
    %c0_56 = arith.constant 0 : index
    %152 = vector.load %arg2[%c4_54, %c0_55, %c0_56] : memref<5x128x128xbf16, #tpu.memory_space<vmem>>, vector<1x128x128xbf16>
    %153 = vector.shape_cast %152 : vector<1x128x128xbf16> to vector<128x128xbf16>
    %cst_57 = arith.constant dense<0.000000e+00> : vector<32x128xf32>
    %154 = tpu.matmul %151, %153, %cst_57 {dimension_numbers = #tpu.dot_dimension_numbers<[1], [0], [0], [1], [0, 0, 1, 1], [], []>} : vector<32x128xbf16>, vector<128x128xbf16>, vector<32x128xf32> -> vector<32x128xf32>
    %c8 = arith.constant 8 : index
    %c0_58 = arith.constant 0 : index
    %155 = vector.load %arg3[%c8, %c0_58] : memref<16x128xf32, #tpu.memory_space<vmem>>, vector<1x128xf32>
    %156 = vector.broadcast %155 : vector<1x128xf32> to vector<32x128xf32>
    %157 = arith.addf %154, %156 : vector<32x128xf32>
    %158 = vector.extract_strided_slice %157 {offsets = [0, 0], sizes = [32, 8], strides = [1, 1]} : vector<32x128xf32> to vector<32x8xf32>
    %159 = vector.shape_cast %158 : vector<32x8xf32> to vector<4x8x8xf32>
    %c0_59 = arith.constant 0 : index
    %c0_60 = arith.constant 0 : index
    %c0_61 = arith.constant 0 : index
    %160 = vector.load %arg4[%c0_59, %c0_60, %c0_61] : memref<4x8x8xf32, #tpu.memory_space<vmem>>, vector<4x8x8xf32>
    tpu.vector_store %arg4[%c0_59, %c0_60, %c0_61], %159 {strides = array<i32>} : memref<4x8x8xf32, #tpu.memory_space<vmem>>, vector<4x8x8xf32>,
    return
  }
  func.func @transform_0(%arg0: i32) -> (i32, i32, i32) {
    %c0_i32 = arith.constant 0 : i32
    %c0_i32_0 = arith.constant 0 : i32
    %c0_i32_1 = arith.constant 0 : i32
    return %arg0, %c0_i32, %c0_i32_0 : i32, i32, i32
  }
  func.func @transform_1(%arg0: i32) -> (i32, i32, i32) {
    %c0_i32 = arith.constant 0 : i32
    %c0_i32_0 = arith.constant 0 : i32
    %c0_i32_1 = arith.constant 0 : i32
    %c0_i32_2 = arith.constant 0 : i32
    return %c0_i32, %c0_i32_0, %c0_i32_1 : i32, i32, i32
  }
  func.func @transform_2(%arg0: i32) -> (i32, i32) {
    %c0_i32 = arith.constant 0 : i32
    %c0_i32_0 = arith.constant 0 : i32
    %c0_i32_1 = arith.constant 0 : i32
    return %c0_i32, %c0_i32_0 : i32, i32
  }
  func.func @transform_3(%arg0: i32) -> (i32, i32, i32) {
    %c0_i32 = arith.constant 0 : i32
    %c0_i32_0 = arith.constant 0 : i32
    %c0_i32_1 = arith.constant 0 : i32
    return %arg0, %c0_i32, %c0_i32_0 : i32, i32, i32
  }
}

</mosaic_0001>

<bundles_post_ra>
// kernel: tpu_custom_call.1
= control target key start
LH: loop header
LB: loop body
LE: loop exit
PB: predicated region body
PF: predicated region fallthrough
CT: control target
= control target key end

     0   :  { %8 = vsyncpa [#allocation3], 0  ;;  %s2325_s0 = inlined_call_operand.hbm [shape: f32[8,8,16], index: 0, kind: input, shape index: {}]   ;;  %s2326_s1 = inlined_call_operand.hbm [shape: bf16[5,128,128], index: 1, kind: input, shape index: {}]   ;;  %s2327_s2 = inlined_call_operand.hbm [shape: f32[16,128], index: 2, kind: input, shape index: {}]   ;;  %s2328_s3 = inlined_call_operand.hbm [shape: f32[8,8,8], index: 3, kind: output, shape index: {}]  }
   0x1   :  { %10 = vsyncpa [#allocation3 + $0x1], 0 }
   0x2   :  { %11 = vsyncpa [#allocation6], 0 }
   0x3   :  { %12 = vsyncpa [#allocation4], 0 }
   0x4   :  { %14 = vsyncpa [#allocation4 + $0x1], 0  ;;  %s1935_s12 = smov 0   ;;  %s1937_s13 = smov 0  }
   0x5   :  { %s1939_s14 = smov 0   ;;  %s1941_s15 = smov 0  }
   0x6 LB: > { %s1956_s16 = sadd.s32 4294967295, %s1903_s15   ;;  %s1424_s17 = sadd.s32 4294967294, %s1903_s15   ;;  %s1903_s15 = sphi %s1941_s15, %s2348_s15   ;;  %s1899_s14 = sphi %s1939_s14, %s2347_s14   ;;  %s1895_s13 = sphi %s1937_s13, %s2346_s13   ;;  %s1891_s12 = sphi %s1935_s12, %s2345_s12  }
   0x7   : > { %p40_p0 = scmp.ne.s32.totalorder %s1895_s13, %s1891_s12  ;;  %p2329_p1 = scmp.eq.s32.totalorder %s1956_s16, 0 }
   0x8   : > { %p112_p3 = scmp.eq.s32.totalorder %s1424_s17, 1  ;;  %p1425_p5 = scmp.ge.s32.totalorder %s1903_s15, 1 }
   0x9   : > { %p1965_p4 = por %p2329_p1, %p40_p0  ;;  %p119_p7 = scmp.lt.s32.totalorder %s1903_s15, 3 }
   0xa   : > { %p1970_p6 = por %p112_p3, %p40_p0  ;;  %s1905_s21 = smov [#allocation5]  }
   0xb   : > { %s2332_s18 = scalar_select %p1965_p4, 1, 0 }
   0xc   : > { %s2333_s19 = scalar_select %p1970_p6, 1, 0 }
   0xd   : > { %p1975_p8 = pnand %p1425_p5, %p119_p7  ;;  %s131_s22 = sshll.u32 %s1905_s21, 4  ;;  %s1979_s22 = int_to_ptr.vmem [resolvable:$true] %s131_s22 }
   0xe   : > { %s1906_s24 = smov [#allocation7]   ;;  %s1747_s28 = scalar_lea.hbm %s2326_s1, 5120 }
   0xf   : > { %p1621_p9 = pneg %p1975_p8  ;;  %s144_s25 = sshll.u32 %s1906_s24, 4  ;;  %s1990_s25 = int_to_ptr.vmem [resolvable:$true] %s144_s25 }
  0x10   : > { %p1748_p12 = scmp.ne.s32.totalorder %s2326_s1, %s1747_s28  ;;  %p1754_p5 = scmp.lt.u32.totalorder %s1747_s28, %s2326_s1 }
  0x11   : > { %p1986_p11 = pnand %p1621_p9, %p2329_p1 }
  0x13   : > { %p1749_p13 = pneg %p1986_p11 }
  0x15   : > { %p1750_p0 = pnand %p1749_p13, %p1748_p12 }
  0x17   : > { %p1751_p3 = pneg %p1750_p0 }
  0x19   : > { %p1756_p7 = pnand %p1754_p5, %p1751_p3 }
  0x1b   : > { %1759 = shalt.err (!%p1756_p7)
}
  0x1c   : > { %s1760_s6 = scalar_lea.vmem %s1979_s22, 5120  ;;  %p1768_p2 = scmp.lt.s32.totalorder %s1979_s22, %s1979_s22 }
  0x1d   : > { %p1761_p9 = scmp.ne.s32.totalorder %s1979_s22, %s1760_s6  ;;  %p1769_p12 = scmp.lt.s32.totalorder %s1760_s6, %s1760_s6 }
  0x1f   : > { %p1763_p10 = pnand %p1761_p9, %p1749_p13  ;;  %p1770_p0 = por %p1769_p12, %p1768_p2 }
  0x21   : > { %p1764_p1 = pneg %p1763_p10 }
  0x23   : > { %p1771_p6 = pnand %p1770_p0, %p1764_p1 }
  0x25   : > { %1774 = shalt.err (!%p1771_p6)
}
  0x26   : > { %s1907_s7 = smov 64   ;;  %s1908_s8 = smov 4  }
  0x27   : > { %1624 = dma.hbm_to_vmem [thread:$0]  (!%p1986_p11), %s2326_s1, 5120, %s1979_s22, [#allocation6], %s1907_s7, %s1907_s7, %s1908_s8  }
  0x28   : > { %s1775_s21 = scalar_lea.hbm %s2327_s2, 256 }
  0x29   : > { %p1776_p2 = scmp.ne.s32.totalorder %s2327_s2, %s1775_s21  ;;  %p1782_p10 = scmp.lt.u32.totalorder %s1775_s21, %s2327_s2 }
  0x2b   : > { %p1778_p1 = pnand %p1776_p2, %p1749_p13 }
  0x2d   : > { %p1779_p6 = pneg %p1778_p1 }
  0x2f   : > { %p1784_p3 = pnand %p1782_p10, %p1779_p6 }
  0x31   : > { %1787 = shalt.err (!%p1784_p3)
}
  0x32   : > { %s1788_s22 = scalar_lea.vmem %s1990_s25, 256  ;;  %p1796_p12 = scmp.lt.s32.totalorder %s1990_s25, %s1990_s25 }
  0x33   : > { %p1789_p5 = scmp.ne.s32.totalorder %s1990_s25, %s1788_s22  ;;  %p1797_p0 = scmp.lt.s32.totalorder %s1788_s22, %s1788_s22 }
  0x35   : > { %p1791_p7 = pnand %p1789_p5, %p1749_p13  ;;  %p1798_p2 = por %p1797_p0, %p1796_p12 }
  0x37   : > { %p1792_p9 = pneg %p1791_p7 }
  0x39   : > { %p1799_p1 = pnand %p1798_p2, %p1792_p9 }
  0x3b   : > { %1802 = shalt.err (!%p1799_p1)
}
  0x3c   : > { %s1909_s29 = smov 128   ;;  %s1910_s30 = smov 8  }
  0x3d   : > { %1627 = dma.hbm_to_vmem [thread:$0]  (!%p1986_p11), %s2327_s2, 256, %s1990_s25, [#allocation6], %s1909_s29, %s1909_s29, %s1910_s30  }
  0x3e   : > { %s2048_s6 = sadd.s32 1, %s1903_s15   ;;  %s27_s8 = sadd.s32 1, %s1899_s14 }
  0x3f   : > { %s24_s7 = ssub.s32 %s1903_s15, %s2048_s6  ;;  %p34_p6 = scmp.ne.s32.totalorder %s1899_s14, %s1895_s13 }
  0x40   : > { %p25_p13 = scmp.eq.s32.totalorder %s24_s7, 0  ;;  %p35_p10 = scmp.eq.s32.totalorder %s1903_s15, 0 }
  0x41   : > { %p2336_p5 = scmp.eq.s32.totalorder %s1956_s16, 1  ;;  %p1638_p9 = scmp.lt.s32.totalorder %s1903_s15, 2 }
  0x42   : > { %s2057_s9 = scalar_select %p25_p13, %s1899_s14, %s27_s8  }
  0x43   : > { %p36_p3 = por %p35_p10, %p34_p6  ;;  %p2061_p7 = por %p2336_p5, %p34_p6 }
  0x44   : > { %s158_s10 = sand.u32 1, %s1899_s14   ;;  %s1478_s25 = sshll.u32 %s1903_s15, 9 }
  0x45   : > { %s2337_s23 = scalar_select %p2061_p7, 1, 0 }
  0x46   : > { %s1429_s11 = sshll.u32 %s158_s10, 5  ;;  %s2071_s24 = scalar_lea.hbm %s2325_s0, %s1478_s25 }
  0x47   : > { %s162_s26 = scalar_lea.vmem [#allocation2], %s1429_s11  ;;  %p2075_p11 = pnand %p1638_p9, %p36_p3 }
  0x48   : > { %s169_s27 = sshll.u32 %s162_s26, 4  ;;  %s2079_s22 = scalar_lea.sflag [#allocation3], %s158_s10  ;;  %s2073_s27 = int_to_ptr.vmem [resolvable:$true] %s169_s27 }
  0x49   : > { %s1803_s4 = scalar_lea.hbm %s2071_s24, 512  ;;  %p1805_p0 = pneg %p2075_p11 }
  0x4a   : > { %p1804_p12 = scmp.ne.s32.totalorder %s2071_s24, %s1803_s4  ;;  %s1808_s8 = scalar_lea.hbm %s2325_s0, 1024 }
  0x4b   : > { %p1809_p13 = scmp.lt.u32.totalorder %s2071_s24, %s2325_s0  ;;  %p1810_p6 = scmp.lt.u32.totalorder %s1808_s8, %s1803_s4 }
  0x4c   : > { %p1806_p2 = pnand %p1805_p0, %p1804_p12  ;;  %p1812_p3 = scmp.lt.u32.totalorder %s1803_s4, %s2071_s24 }
  0x4d   : > { %p1811_p10 = por %p1810_p6, %p1809_p13 }
  0x4e   : > { %p1807_p1 = pneg %p1806_p2 }
  0x4f   : > { %p1813_p5 = por %p1812_p3, %p1811_p10 }
  0x51   : > { %p1814_p9 = pnand %p1813_p5, %p1807_p1 }
  0x53   : > { %1817 = shalt.err (!%p1814_p9)
}
  0x54   : > { %s1818_s10 = scalar_lea.vmem %s2073_s27, 512  ;;  %s1911_s17 = smov [#allocation2]  }
  0x55   : > { %p1819_p12 = scmp.ne.s32.totalorder %s2073_s27, %s1818_s10  ;;  %s1823_s21 = sshll.u32 %s1911_s17, 4  ;;  %s1824_s21 = int_to_ptr.vmem [resolvable:$false] %s1823_s21 }
  0x56   : > { %s1825_s26 = scalar_lea.vmem %s1824_s21, 1024  ;;  %p1826_p4 = scmp.lt.s32.totalorder %s2073_s27, %s1824_s21 }
  0x57   : > { %p1821_p2 = pnand %p1819_p12, %p1805_p0  ;;  %p1827_p13 = scmp.lt.s32.totalorder %s1825_s26, %s1818_s10 }
  0x59   : > { %p1822_p7 = pneg %p1821_p2  ;;  %p1828_p6 = por %p1827_p13, %p1826_p4 }
  0x5b   : > { %p1829_p10 = pnand %p1828_p6, %p1822_p7 }
  0x5d   : > { %1832 = shalt.err (!%p1829_p10)
}
  0x5e   : > { %1631 = dma.hbm_to_vmem [thread:$0]  (!%p2075_p11), %s2071_s24, 512, %s2073_s27, %s2079_s22, %s1909_s29, %s1909_s29, %s1910_s30  }
  0x5f   : > { %181 = sbr.rel (%p1975_p8) target bundleno = 1395 (0x573), region = 32  ;;  %s2113_s4 = sand.u32 (!%p1975_p8), 1, %s1895_s13  }
  0x60   : > { %s1433_s5 = sshll.u32 (!%p1975_p8), %s2113_s4, 5  ;;  %s184_s7 = scalar_lea.sflag (!%p1975_p8), [#allocation3], %s2113_s4 }
  0x61   : > { %s187_s28 = scalar_lea.vmem (!%p1975_p8), [#allocation2], %s1433_s5  ;;  %p2339_p4 = scmp.ne.s32.totalorder (!%p1975_p8), %s2332_s18, 0 }
  0x66   : > { %1878 = dma.done.wait (%p2339_p4), %s184_s7, 512  }
  0x67   : > { %1880 = vsyncadd (%p2339_p4), %s184_s7, 4294966784  ;;  %p2340_p7 = scmp.eq.s32.totalorder %s1956_s16, 0 }
  0x69   : > { %1882 = dma.done.wait (%p2340_p7), [#allocation6], 5376   ;;  %p2341_p8 = pmov %p2340_p7 }
  0x6a   : > { %v1682_v0 = vld [vmem:[#allocation5] sm:$0xff]   ;;  %v222_v2 = vld [vmem:[%s187_s28 + $0x8] sm:$0xff]  ;;  %vm237_vm0 = vcmask 130048   ;;  %v223_v3 = vld [vmem:[%s187_s28 + $0x10] sm:$0xff]  ;;  %s217_s18 = scalar_lea.vmem [#allocation8], %s1433_s5  ;;  %vm1313_vm1 = vcmask 64512  }
  0x6b   : > { %1884 = vsyncadd (%p2341_p8), [#allocation6], 4294961920  ;;  %v221_v1 = vld [vmem:[%s187_s28] sm:$0xff]  ;;  %1523 = vmatprep.subr.bf16.mxu0 %v1682_v0  ;;  %v224_v5 = vld [vmem:[%s187_s28 + $0x18] sm:$0xff]  ;;  %s1332_s20 = sshll.u32 %s217_s18, 4  ;;  %s1479_s29 = sshll.u32 %s1956_s16, 9  ;;  %s2276_s20 = int_to_ptr.vmem [resolvable:$true] %s1332_s20 }
  0x6c   : > { %v225_v4 = vpack.c.bf16 %v222_v2, %v221_v1  ;;  %1524 = vmatpush3.bf16.msra.mxu0 %v1682_v0  ;;  %v226_v6 = vpack.c.bf16 %v224_v5, %v223_v3  ;;  %v1683_v7 = vld [vmem:[#allocation5 + $0x40] sm:$0xff]   ;;  %v1684_v8 = vld [vmem:[#allocation5 + $0x48] sm:$0xff]   ;;  %v1685_v9 = vld [vmem:[#allocation5 + $0x50] sm:$0xff]   ;;  %s2281_s27 = scalar_lea.hbm %s2328_s3, %s1479_s29  ;;  %s1319_s16 = scalar_lea.sflag [#allocation4], %s2113_s4 }
  0x6d   : > { %1529 = vmatprep.subr.bf16.mxu1 %v1683_v7  ;;  %v1686_v10 = vld [vmem:[#allocation5 + $0x58] sm:$0xff]   ;;  %v1687_v11 = vld [vmem:[#allocation5 + $0x60] sm:$0xff]   ;;  %v1688_v12 = vld [vmem:[#allocation5 + $0x68] sm:$0xff]   ;;  %s1833_s22 = scalar_lea.vmem %s2276_s20, 512  ;;  %p2342_p0 = scmp.ne.s32.totalorder %s2337_s23, 0 }
  0x6e   : > { %1525 = vmatprep.mubr.msk.bf16.mxu0 %vm237_vm0, %v225_v4  ;;  %1530 = vmatpush3.bf16.msra.mxu1 %v1683_v7  ;;  %v1689_v13 = vld [vmem:[#allocation5 + $0x70] sm:$0xff]   ;;  %v1690_v14 = vld [vmem:[#allocation5 + $0x78] sm:$0xff]   ;;  %p1834_p11 = scmp.ne.s32.totalorder %s2276_s20, %s1833_s22  ;;  %s1912_s8 = smov [#allocation8]  }
  0x6f   : > { %1526 = vmatmul.mubr.msk.bf16.vlgmr.msra.gmra.mrb[0].mxu0 %vm237_vm0, %v226_v6  ;;  %1531 = vmatprep.subr.bf16.mxu1 %v1684_v8  ;;  %s1837_s11 = sshll.u32 %s1912_s8, 4  ;;  %s1838_s11 = int_to_ptr.vmem [resolvable:$false] %s1837_s11 }
  0x70   : > { %p1835_p1 = pnand %p1834_p11, %p2342_p0  ;;  %s1839_s25 = scalar_lea.vmem %s1838_s11, 1024 }
  0x71   : > { %p1840_p5 = scmp.lt.s32.totalorder %s2276_s20, %s1838_s11  ;;  %p1841_p9 = scmp.lt.s32.totalorder %s1839_s25, %s1833_s22 }
  0x72   : > { %1532 = vmatpush3.bf16.msra.mxu1 %v1684_v8  ;;  %p1836_p3 = pneg %p1835_p1 }
  0x73   : > { %1533 = vmatprep.subr.bf16.mxu1 %v1685_v9  ;;  %p1842_p12 = por %p1841_p9, %p1840_p5 }
  0x75   : > { %p1843_p2 = pnand %p1842_p12, %p1836_p3 }
  0x76   : > { %1534 = vmatpush3.bf16.msra.mxu1 %v1685_v9 }
  0x77   : > { %1535 = vmatprep.subr.bf16.mxu1 %v1686_v10 }
  0x7a   : > { %1536 = vmatpush3.bf16.msra.mxu1 %v1686_v10 }
  0x7b   : > { %1537 = vmatprep.subr.bf16.mxu1 %v1687_v11 }
  0x7e   : > { %1538 = vmatpush3.bf16.msra.mxu1 %v1687_v11 }
  0x7f   : > { %1539 = vmatprep.subr.bf16.mxu1 %v1688_v12 }
  0x82   : > { %1540 = vmatpush3.bf16.msra.mxu1 %v1688_v12 }
  0x83   : > { %1541 = vmatprep.subr.bf16.mxu1 %v1689_v13 }
  0x86   : > { %1542 = vmatpush3.bf16.msra.mxu1 %v1689_v13 }
  0x87   : > { %1543 = vmatprep.subr.bf16.mxu1 %v1690_v14 }
  0x8a   : > { %1544 = vmatpush3.bf16.msra.mxu1 %v1690_v14 }
 0x142   : > { %v2127_v15 = vpop.f32.mrb[0].mxu0 }
 0x143   : > { %v305_v16 = vrot.slane %v2127_v15, 4  ;;  %v324_v17 = vmul.f32 %v2127_v15, %v2127_v15  ;;  %v2132_v18 = vpop.f32.mrb[1].mxu0 }
 0x144   : > { %v293_v19 = vrot.slane %v2132_v18, 4  ;;  %v322_v20 = vmul.f32 %v2132_v18, %v2132_v18  ;;  %v2137_v21 = vpop.f32.mrb[2].mxu0 }
 0x145   : > { %v306_v22 = vadd.f32 %v2127_v15, %v305_v16  ;;  %v338_v23 = vrot.slane %v324_v17, 4  ;;  %v311_v24 = vrot.slane %v2137_v21, 4  ;;  %v325_v25 = vmul.f32 %v2137_v21, %v2137_v21  ;;  %v2143_v26 = vpop.f32.mrb[3].mxu0 }
 0x146   : > { %v294_v27 = vadd.f32 %v293_v19, %v2132_v18  ;;  %v326_v28 = vrot.slane %v322_v20, 4  ;;  %v299_v29 = vrot.slane %v2143_v26, 4  ;;  %v323_v30 = vmul.f32 %v2143_v26, %v2143_v26 }
 0x147   : > { %v307_v31 = vrot.slane %v306_v22, 2  ;;  %v339_v32 = vadd.f32 %v338_v23, %v324_v17  ;;  %v312_v33 = vadd.f32 %v2137_v21, %v311_v24  ;;  %v344_v34 = vrot.slane %v325_v25, 4 }
 0x148   : > { %v295_v35 = vrot.slane %v294_v27, 2  ;;  %v327_v36 = vadd.f32 %v326_v28, %v322_v20  ;;  %v300_v37 = vadd.f32 %v299_v29, %v2143_v26  ;;  %v332_v38 = vrot.slane %v323_v30, 4 }
 0x149   : > { %v308_v39 = vadd.f32 %v307_v31, %v306_v22  ;;  %v340_v40 = vrot.slane %v339_v32, 2  ;;  %v313_v41 = vrot.slane %v312_v33, 2  ;;  %v345_v42 = vadd.f32 %v344_v34, %v325_v25 }
 0x14a   : > { %v296_v43 = vadd.f32 %v295_v35, %v294_v27  ;;  %v328_v44 = vrot.slane %v327_v36, 2  ;;  %v301_v45 = vrot.slane %v300_v37, 2  ;;  %v333_v46 = vadd.f32 %v332_v38, %v323_v30 }
 0x14b   : > { %v309_v47 = vrot.slane %v308_v39, 1  ;;  %v341_v48 = vadd.f32 %v340_v40, %v339_v32  ;;  %v314_v49 = vadd.f32 %v313_v41, %v312_v33  ;;  %v346_v50 = vrot.slane %v345_v42, 2 }
 0x14c   : > { %v297_v51 = vrot.slane %v296_v43, 1  ;;  %v329_v52 = vadd.f32 %v328_v44, %v327_v36  ;;  %v302_v53 = vadd.f32 %v301_v45, %v300_v37  ;;  %v334_v54 = vrot.slane %v333_v46, 2  ;;  %v229_v37 = vld [vmem:[#allocation7] sm:$0x1] }
 0x14d   : > { %v310_v55 = vadd.f32 %v309_v47, %v308_v39  ;;  %v342_v56 = vrot.slane %v341_v48, 1  ;;  %v315_v57 = vrot.slane %v314_v49, 1  ;;  %v347_v58 = vadd.f32 %v346_v50, %v345_v42 }
 0x14e   : > { %v298_v59 = vadd.f32 %v297_v51, %v296_v43  ;;  %v330_v60 = vrot.slane %v329_v52, 1  ;;  %v303_v61 = vrot.slane %v302_v53, 1  ;;  %v335_v62 = vadd.f32 %v334_v54, %v333_v46  ;;  %v230_v43 = vld [vmem:[#allocation7 + $0x1] sm:$0x1] }
 0x14f   : > { %v320_v63 = vmul.f32 0.125, %v310_v55  ;;  %v343_v0 = vadd.f32 %v342_v56, %v341_v48  ;;  %v316_v1 = vadd.f32 %v315_v57, %v314_v49  ;;  %v348_v2 = vrot.slane %v347_v58, 1 }
 0x150   : > { %v318_v3 = vmul.f32 0.125, %v298_v59  ;;  %v331_v4 = vadd.f32 %v330_v60, %v329_v52  ;;  %v304_v5 = vadd.f32 %v303_v61, %v302_v53  ;;  %v336_v6 = vrot.slane %v335_v62, 1 }
 0x151   : > { %v352_v7 = vmul.f32 0.125, %v343_v0  ;;  %v356_v8 = vmul.f32 %v320_v63, %v320_v63  ;;  %v321_v9 = vmul.f32 0.125, %v316_v1  ;;  %v349_v10 = vadd.f32 %v348_v2, %v347_v58 }
 0x152   : > { %v350_v11 = vmul.f32 0.125, %v331_v4  ;;  %v354_v12 = vmul.f32 %v318_v3, %v318_v3  ;;  %v319_v13 = vmul.f32 0.125, %v304_v5  ;;  %v337_v14 = vadd.f32 %v336_v6, %v335_v62 }
 0x153   : > { %v360_v16 = vsub.f32 %v352_v7, %v356_v8  ;;  %v353_v17 = vmul.f32 0.125, %v349_v10  ;;  %v357_v19 = vmul.f32 %v321_v9, %v321_v9  ;;  %v386_v34 = vlaneseq }
 0x154   : > { %v358_v20 = vsub.f32 %v350_v11, %v354_v12  ;;  %v351_v22 = vmul.f32 0.125, %v337_v14  ;;  %v355_v23 = vmul.f32 %v319_v13, %v319_v13  ;;  %v1691_v12 = vld [vmem:[#allocation5 + $0x80] sm:$0xff]  }
 0x155   : > { %v364_v24 = vmax.f32 %v360_v16, 0.0  ;;  %v361_v25 = vsub.f32 %v353_v17, %v357_v19  ;;  %v387_v36 = vshrl.u32 %v386_v34, 7  ;;  %1549 = vmatprep.subr.bf16.mxu0 %v1691_v12  ;;  %v1695_v14 = vld [vmem:[#allocation5 + $0xa0] sm:$0xff]   ;;  %v1696_v16 = vld [vmem:[#allocation5 + $0xa8] sm:$0xff]   ;;  %v1697_v17 = vld [vmem:[#allocation5 + $0xb0] sm:$0xff]  }
 0x156   : > { %v362_v27 = vmax.f32 %v358_v20, 0.0  ;;  %v359_v28 = vsub.f32 %v351_v22, %v355_v23  ;;  %1550 = vmatpush3.bf16.msra.mxu0 %v1691_v12  ;;  %v1698_v19 = vld [vmem:[#allocation5 + $0xb8] sm:$0xff]  }
 0x157   : > { %v368_v29 = vadd.f32 1e-05, %v364_v24  ;;  %v365_v30 = vmax.f32 %v361_v25, 0.0  ;;  %v2151_v38 = vsub.s32 0, %v387_v36 }
 0x158   : > { %v366_v31 = vadd.f32 1e-05, %v362_v27  ;;  %v363_v32 = vmax.f32 %v359_v28, 0.0 }
 0x159   : > { %1715 = vrsqrt.f32 %v368_v29  ;;  %v369_v33 = vadd.f32 1e-05, %v365_v30 }
 0x15a   : > { %1717 = vrsqrt.f32 %v366_v31  ;;  %v367_v35 = vadd.f32 1e-05, %v363_v32 }
 0x15b   : > { %1719 = vrsqrt.f32 %v369_v33 }
 0x15c   : > { %1721 = vrsqrt.f32 %v367_v35 }
 0x163   : > { %v1716_v39 = vpop.eup %1715 }
 0x164   : > { %v1718_v40 = vpop.eup %1717  ;;  %v376_v41 = vmul.f32 %v1716_v39, %v229_v37 }
 0x165   : > { %v1720_v42 = vpop.eup %1719  ;;  %v374_v44 = vmul.f32 %v1718_v40, %v229_v37 }
 0x166   : > { %v1722_v45 = vpop.eup %1721  ;;  %v380_v46 = vmul.f32 %v376_v41, %v320_v63  ;;  %v397_v47 = vrot.slane %v376_v41, %v2151_v38  ;;  %v377_v48 = vmul.f32 %v1720_v42, %v229_v37 }
 0x167   : > { %v375_v49 = vmul.f32 %v1722_v45, %v229_v37  ;;  %v378_v50 = vmul.f32 %v374_v44, %v318_v3  ;;  %v389_v51 = vrot.slane %v374_v44, %v2151_v38 }
 0x168   : > { %v381_v52 = vmul.f32 %v377_v48, %v321_v9  ;;  %v401_v53 = vrot.slane %v377_v48, %v2151_v38  ;;  %v384_v54 = vsub.f32 %v230_v43, %v380_v46  ;;  %v404_v58 = vmul.f32 %v2127_v15, %v397_v47 }
 0x169   : > { %v379_v55 = vmul.f32 %v375_v49, %v319_v13  ;;  %v382_v56 = vsub.f32 %v230_v43, %v378_v50  ;;  %v393_v57 = vrot.slane %v375_v49, %v2151_v38  ;;  %v402_v62 = vmul.f32 %v389_v51, %v2132_v18  ;;  %v1694_v13 = vld [vmem:[#allocation5 + $0x98] sm:$0xff]  }
 0x16a   : > { %v385_v59 = vsub.f32 %v230_v43, %v381_v52  ;;  %v417_v60 = vrot.slane %v384_v54, %v2151_v38  ;;  %v405_v0 = vmul.f32 %v2137_v21, %v401_v53  ;;  %v1692_v21 = vld [vmem:[#allocation5 + $0x88] sm:$0xff]  }
 0x16b   : > { %v383_v61 = vsub.f32 %v230_v43, %v379_v55  ;;  %v409_v63 = vrot.slane %v382_v56, %v2151_v38  ;;  %v403_v3 = vmul.f32 %v393_v57, %v2143_v26  ;;  %1551 = vmatprep.subr.bf16.mxu0 %v1692_v21  ;;  %v1693_v26 = vld [vmem:[#allocation5 + $0x90] sm:$0xff]  }
 0x16c   : > { %v421_v1 = vrot.slane %v385_v59, %v2151_v38  ;;  %v424_v2 = vadd.f32 %v417_v60, %v404_v58  ;;  %1552 = vmatpush3.bf16.msra.mxu0 %v1692_v21 }
 0x16d   : > { %v413_v4 = vrot.slane %v383_v61, %v2151_v38  ;;  %v422_v5 = vadd.f32 %v409_v63, %v402_v62  ;;  %1553 = vmatprep.subr.bf16.mxu0 %v1693_v26 }
 0x16e   : > { %v425_v6 = vadd.f32 %v421_v1, %v405_v0  ;;  %v428_v7 = vmax.f32 %v424_v2, 0.0 }
 0x16f   : > { %v423_v15 = vadd.f32 %v413_v4, %v403_v3  ;;  %v426_v9 = vmax.f32 %v422_v5, 0.0 }
 0x170   : > { %v429_v8 = vmax.f32 %v425_v6, 0.0  ;;  %1554 = vmatpush3.bf16.msra.mxu0 %v1693_v26 }
 0x171   : > { %v427_v10 = vmax.f32 %v423_v15, 0.0  ;;  %1555 = vmatprep.subr.bf16.mxu0 %v1694_v13 }
 0x172   : > { %v431_v11 = vpack.c.bf16 %v429_v8, %v428_v7 }
 0x173   : > { %v430_v18 = vpack.c.bf16 %v427_v10, %v426_v9 }
 0x174   : > { %1556 = vmatpush3.bf16.msra.mxu0 %v1694_v13 }
 0x175   : > { %1545 = vmatprep.mubr.bf16.mxu1 %v430_v18  ;;  %1557 = vmatprep.subr.bf16.mxu0 %v1695_v14 }
 0x176   : > { %1546 = vmatmul.mubr.bf16.vlgmr.msra.gmra.mrb[0].mxu1 %v431_v11 }
 0x178   : > { %1558 = vmatpush3.bf16.msra.mxu0 %v1695_v14 }
 0x179   : > { %1559 = vmatprep.subr.bf16.mxu0 %v1696_v16 }
 0x17c   : > { %1560 = vmatpush3.bf16.msra.mxu0 %v1696_v16 }
 0x17d   : > { %1561 = vmatprep.subr.bf16.mxu0 %v1697_v17 }
 0x180   : > { %1562 = vmatpush3.bf16.msra.mxu0 %v1697_v17 }
 0x181   : > { %1563 = vmatprep.subr.bf16.mxu0 %v1698_v19 }
 0x184   : > { %1564 = vmatpush3.bf16.msra.mxu0 %v1698_v19 }
 0x249   : > { %v2165_v20 = vpop.f32.mrb[0].mxu1 }
 0x24a   : > { %v560_v22 = vrot.slane %v2165_v20, 4  ;;  %v578_v23 = vmul.f32 %v2165_v20, %v2165_v20  ;;  %v2170_v24 = vpop.f32.mrb[1].mxu1 }
 0x24b   : > { %v548_v25 = vrot.slane %v2170_v24, 4  ;;  %v576_v27 = vmul.f32 %v2170_v24, %v2170_v24  ;;  %v2175_v28 = vpop.f32.mrb[2].mxu1 }
 0x24c   : > { %v561_v29 = vadd.f32 %v2165_v20, %v560_v22  ;;  %v592_v30 = vrot.slane %v578_v23, 4  ;;  %v566_v31 = vrot.slane %v2175_v28, 4  ;;  %v579_v32 = vmul.f32 %v2175_v28, %v2175_v28  ;;  %v2181_v33 = vpop.f32.mrb[3].mxu1 }
 0x24d   : > { %v549_v34 = vadd.f32 %v548_v25, %v2170_v24  ;;  %v580_v35 = vrot.slane %v576_v27, 4  ;;  %v554_v36 = vrot.slane %v2181_v33, 4  ;;  %v577_v37 = vmul.f32 %v2181_v33, %v2181_v33 }
 0x24e   : > { %v562_v39 = vrot.slane %v561_v29, 2  ;;  %v593_v40 = vadd.f32 %v592_v30, %v578_v23  ;;  %v567_v41 = vadd.f32 %v2175_v28, %v566_v31  ;;  %v598_v42 = vrot.slane %v579_v32, 4 }
 0x24f   : > { %v550_v43 = vrot.slane %v549_v34, 2  ;;  %v581_v44 = vadd.f32 %v580_v35, %v576_v27  ;;  %v555_v45 = vadd.f32 %v554_v36, %v2181_v33  ;;  %v586_v46 = vrot.slane %v577_v37, 4 }
 0x250   : > { %v563_v47 = vadd.f32 %v562_v39, %v561_v29  ;;  %v594_v48 = vrot.slane %v593_v40, 2  ;;  %v568_v49 = vrot.slane %v567_v41, 2  ;;  %v599_v50 = vadd.f32 %v598_v42, %v579_v32 }
 0x251   : > { %v551_v51 = vadd.f32 %v550_v43, %v549_v34  ;;  %v582_v52 = vrot.slane %v581_v44, 2  ;;  %v556_v53 = vrot.slane %v555_v45, 2  ;;  %v587_v54 = vadd.f32 %v586_v46, %v577_v37 }
 0x252   : > { %v564_v55 = vrot.slane %v563_v47, 1  ;;  %v595_v56 = vadd.f32 %v594_v48, %v593_v40  ;;  %v569_v57 = vadd.f32 %v568_v49, %v567_v41  ;;  %v600_v58 = vrot.slane %v599_v50, 2  ;;  %v450_v49 = vld [vmem:[#allocation7 + $0x3] sm:$0x1] }
 0x253   : > { %v552_v59 = vrot.slane %v551_v51, 1  ;;  %v583_v60 = vadd.f32 %v582_v52, %v581_v44  ;;  %v557_v61 = vadd.f32 %v556_v53, %v555_v45  ;;  %v588_v62 = vrot.slane %v587_v54, 2  ;;  %v449_v44 = vld [vmem:[#allocation7 + $0x2] sm:$0x1] }
 0x254   : > { %v565_v63 = vadd.f32 %v564_v55, %v563_v47  ;;  %v596_v0 = vrot.slane %v595_v56, 1  ;;  %v570_v1 = vrot.slane %v569_v57, 1  ;;  %v601_v2 = vadd.f32 %v600_v58, %v599_v50 }
 0x255   : > { %v553_v3 = vadd.f32 %v552_v59, %v551_v51  ;;  %v584_v4 = vrot.slane %v583_v60, 1  ;;  %v558_v5 = vrot.slane %v557_v61, 1  ;;  %v589_v6 = vadd.f32 %v588_v62, %v587_v54 }
 0x256   : > { %v574_v15 = vmul.f32 0.125, %v565_v63  ;;  %v597_v7 = vadd.f32 %v596_v0, %v595_v56  ;;  %v571_v8 = vadd.f32 %v570_v1, %v569_v57  ;;  %v602_v9 = vrot.slane %v601_v2, 1 }
 0x257   : > { %v572_v10 = vmul.f32 0.125, %v553_v3  ;;  %v585_v11 = vadd.f32 %v584_v4, %v583_v60  ;;  %v559_v18 = vadd.f32 %v558_v5, %v557_v61  ;;  %v590_v12 = vrot.slane %v589_v6, 1 }
 0x258   : > { %v606_v21 = vmul.f32 0.125, %v597_v7  ;;  %v610_v26 = vmul.f32 %v574_v15, %v574_v15  ;;  %v575_v13 = vmul.f32 0.125, %v571_v8  ;;  %v603_v14 = vadd.f32 %v602_v9, %v601_v2 }
 0x259   : > { %v604_v16 = vmul.f32 0.125, %v585_v11  ;;  %v608_v17 = vmul.f32 %v572_v10, %v572_v10  ;;  %v573_v19 = vmul.f32 0.125, %v559_v18  ;;  %v591_v22 = vadd.f32 %v590_v12, %v589_v6 }
 0x25a   : > { %v614_v23 = vsub.f32 %v606_v21, %v610_v26  ;;  %v607_v25 = vmul.f32 0.125, %v603_v14  ;;  %v611_v27 = vmul.f32 %v575_v13, %v575_v13  ;;  %v1699_v14 = vld [vmem:[#allocation5 + $0xc0] sm:$0xff]  }
 0x25b   : > { %v612_v29 = vsub.f32 %v604_v16, %v608_v17  ;;  %v605_v30 = vmul.f32 0.125, %v591_v22  ;;  %v609_v31 = vmul.f32 %v573_v19, %v573_v19  ;;  %1569 = vmatprep.subr.bf16.mxu1 %v1699_v14  ;;  %v1702_v16 = vld [vmem:[#allocation5 + $0xd8] sm:$0xff]   ;;  %v1703_v17 = vld [vmem:[#allocation5 + $0xe0] sm:$0xff]   ;;  %v1705_v22 = vld [vmem:[#allocation5 + $0xf0] sm:$0xff]  }
 0x25c   : > { %v618_v32 = vmax.f32 %v614_v23, 0.0  ;;  %v615_v34 = vsub.f32 %v607_v25, %v611_v27  ;;  %1570 = vmatpush3.bf16.msra.mxu1 %v1699_v14  ;;  %v1706_v23 = vld [vmem:[#allocation5 + $0xf8] sm:$0xff]  }
 0x25d   : > { %v616_v35 = vmax.f32 %v612_v29, 0.0  ;;  %v613_v36 = vsub.f32 %v605_v30, %v609_v31 }
 0x25e   : > { %v622_v37 = vadd.f32 1e-05, %v618_v32  ;;  %v619_v39 = vmax.f32 %v615_v34, 0.0 }
 0x25f   : > { %v620_v40 = vadd.f32 1e-05, %v616_v35  ;;  %v617_v41 = vmax.f32 %v613_v36, 0.0 }
 0x260   : > { %1723 = vrsqrt.f32 %v622_v37  ;;  %v623_v42 = vadd.f32 1e-05, %v619_v39 }
 0x261   : > { %1725 = vrsqrt.f32 %v620_v40  ;;  %v621_v43 = vadd.f32 1e-05, %v617_v41 }
 0x262   : > { %1727 = vrsqrt.f32 %v623_v42 }
 0x263   : > { %1729 = vrsqrt.f32 %v621_v43 }
 0x26a   : > { %v1724_v45 = vpop.eup %1723 }
 0x26b   : > { %v1726_v46 = vpop.eup %1725  ;;  %v630_v47 = vmul.f32 %v1724_v45, %v449_v44 }
 0x26c   : > { %v1728_v48 = vpop.eup %1727  ;;  %v628_v50 = vmul.f32 %v1726_v46, %v449_v44 }
 0x26d   : > { %v1730_v51 = vpop.eup %1729  ;;  %v634_v52 = vmul.f32 %v630_v47, %v574_v15  ;;  %v651_v53 = vrot.slane %v630_v47, %v2151_v38  ;;  %v631_v54 = vmul.f32 %v1728_v48, %v449_v44 }
 0x26e   : > { %v632_v55 = vmul.f32 %v628_v50, %v572_v10  ;;  %v643_v56 = vrot.slane %v628_v50, %v2151_v38  ;;  %v629_v57 = vmul.f32 %v1730_v51, %v449_v44 }
 0x26f   : > { %v638_v58 = vsub.f32 %v450_v49, %v634_v52  ;;  %v635_v59 = vmul.f32 %v631_v54, %v575_v13  ;;  %v655_v60 = vrot.slane %v631_v54, %v2151_v38  ;;  %v658_v0 = vmul.f32 %v2165_v20, %v651_v53 }
 0x270   : > { %v633_v61 = vmul.f32 %v629_v57, %v573_v19  ;;  %v647_v62 = vrot.slane %v629_v57, %v2151_v38  ;;  %v636_v63 = vsub.f32 %v450_v49, %v632_v55  ;;  %v656_v3 = vmul.f32 %v643_v56, %v2170_v24  ;;  %v1704_v19 = vld [vmem:[#allocation5 + $0xe8] sm:$0xff]  }
 0x271   : > { %v671_v1 = vrot.slane %v638_v58, %v2151_v38  ;;  %v639_v2 = vsub.f32 %v450_v49, %v635_v59  ;;  %v659_v15 = vmul.f32 %v2175_v28, %v655_v60  ;;  %v1700_v28 = vld [vmem:[#allocation5 + $0xc8] sm:$0xff]  }
 0x272   : > { %v637_v4 = vsub.f32 %v450_v49, %v633_v61  ;;  %v663_v5 = vrot.slane %v636_v63, %v2151_v38  ;;  %v657_v8 = vmul.f32 %v647_v62, %v2181_v33  ;;  %1571 = vmatprep.subr.bf16.mxu1 %v1700_v28  ;;  %v1701_v33 = vld [vmem:[#allocation5 + $0xd0] sm:$0xff]  }
 0x273   : > { %v678_v6 = vadd.f32 %v671_v1, %v658_v0  ;;  %v675_v7 = vrot.slane %v639_v2, %v2151_v38  ;;  %1572 = vmatpush3.bf16.msra.mxu1 %v1700_v28 }
 0x274   : > { %v667_v9 = vrot.slane %v637_v4, %v2151_v38  ;;  %v676_v10 = vadd.f32 %v663_v5, %v656_v3  ;;  %1573 = vmatprep.subr.bf16.mxu1 %v1701_v33 }
 0x275   : > { %v679_v11 = vadd.f32 %v675_v7, %v659_v15  ;;  %v682_v18 = vmax.f32 %v678_v6, 0.0 }
 0x276   : > { %v677_v20 = vadd.f32 %v667_v9, %v657_v8  ;;  %v680_v21 = vmax.f32 %v676_v10, 0.0 }
 0x277   : > { %v683_v12 = vmax.f32 %v679_v11, 0.0  ;;  %1574 = vmatpush3.bf16.msra.mxu1 %v1701_v33 }
 0x278   : > { %v681_v26 = vmax.f32 %v677_v20, 0.0  ;;  %1575 = vmatprep.subr.bf16.mxu1 %v1702_v16 }
 0x279   : > { %v685_v24 = vpack.c.bf16 %v683_v12, %v682_v18 }
 0x27a   : > { %v684_v13 = vpack.c.bf16 %v681_v26, %v680_v21 }
 0x27b   : > { %1576 = vmatpush3.bf16.msra.mxu1 %v1702_v16 }
 0x27c   : > { %1565 = vmatprep.mubr.bf16.mxu0 %v684_v13  ;;  %1577 = vmatprep.subr.bf16.mxu1 %v1703_v17 }
 0x27d   : > { %1566 = vmatmul.mubr.bf16.vlgmr.msra.gmra.mrb[4].mxu0 %v685_v24 }
 0x27f   : > { %1578 = vmatpush3.bf16.msra.mxu1 %v1703_v17 }
 0x280   : > { %1579 = vmatprep.subr.bf16.mxu1 %v1704_v19 }
 0x283   : > { %1580 = vmatpush3.bf16.msra.mxu1 %v1704_v19 }
 0x284   : > { %1581 = vmatprep.subr.bf16.mxu1 %v1705_v22 }
 0x287   : > { %1582 = vmatpush3.bf16.msra.mxu1 %v1705_v22 }
 0x288   : > { %1583 = vmatprep.subr.bf16.mxu1 %v1706_v23 }
 0x28b   : > { %1584 = vmatpush3.bf16.msra.mxu1 %v1706_v23 }
 0x350   : > { %v2201_v25 = vpop.f32.mrb[4].mxu0 }
 0x351   : > { %v814_v27 = vrot.slane %v2201_v25, 4  ;;  %v832_v29 = vmul.f32 %v2201_v25, %v2201_v25  ;;  %v2206_v30 = vpop.f32.mrb[5].mxu0 }
 0x352   : > { %v802_v31 = vrot.slane %v2206_v30, 4  ;;  %v830_v32 = vmul.f32 %v2206_v30, %v2206_v30  ;;  %v2211_v34 = vpop.f32.mrb[6].mxu0 }
 0x353   : > { %v815_v35 = vadd.f32 %v2201_v25, %v814_v27  ;;  %v846_v36 = vrot.slane %v832_v29, 4  ;;  %v820_v37 = vrot.slane %v2211_v34, 4  ;;  %v833_v39 = vmul.f32 %v2211_v34, %v2211_v34  ;;  %v2217_v40 = vpop.f32.mrb[7].mxu0 }
 0x354   : > { %v803_v41 = vadd.f32 %v802_v31, %v2206_v30  ;;  %v834_v42 = vrot.slane %v830_v32, 4  ;;  %v808_v43 = vrot.slane %v2217_v40, 4  ;;  %v831_v44 = vmul.f32 %v2217_v40, %v2217_v40 }
 0x355   : > { %v816_v45 = vrot.slane %v815_v35, 2  ;;  %v847_v46 = vadd.f32 %v846_v36, %v832_v29  ;;  %v821_v47 = vadd.f32 %v2211_v34, %v820_v37  ;;  %v852_v48 = vrot.slane %v833_v39, 4 }
 0x356   : > { %v804_v49 = vrot.slane %v803_v41, 2  ;;  %v835_v50 = vadd.f32 %v834_v42, %v830_v32  ;;  %v809_v51 = vadd.f32 %v808_v43, %v2217_v40  ;;  %v840_v52 = vrot.slane %v831_v44, 4 }
 0x357   : > { %v817_v53 = vadd.f32 %v816_v45, %v815_v35  ;;  %v848_v54 = vrot.slane %v847_v46, 2  ;;  %v822_v55 = vrot.slane %v821_v47, 2  ;;  %v853_v56 = vadd.f32 %v852_v48, %v833_v39 }
 0x358   : > { %v805_v57 = vadd.f32 %v804_v49, %v803_v41  ;;  %v836_v58 = vrot.slane %v835_v50, 2  ;;  %v810_v59 = vrot.slane %v809_v51, 2  ;;  %v841_v60 = vadd.f32 %v840_v52, %v831_v44 }
 0x359   : > { %v818_v61 = vrot.slane %v817_v53, 1  ;;  %v849_v62 = vadd.f32 %v848_v54, %v847_v46  ;;  %v823_v63 = vadd.f32 %v822_v55, %v821_v47  ;;  %v854_v0 = vrot.slane %v853_v56, 2  ;;  %v704_v55 = vld [vmem:[#allocation7 + $0x5] sm:$0x1] }
 0x35a   : > { %v806_v1 = vrot.slane %v805_v57, 1  ;;  %v837_v2 = vadd.f32 %v836_v58, %v835_v50  ;;  %v811_v3 = vadd.f32 %v810_v59, %v809_v51  ;;  %v842_v4 = vrot.slane %v841_v60, 2  ;;  %v703_v50 = vld [vmem:[#allocation7 + $0x4] sm:$0x1] }
 0x35b   : > { %v819_v5 = vadd.f32 %v818_v61, %v817_v53  ;;  %v850_v6 = vrot.slane %v849_v62, 1  ;;  %v824_v15 = vrot.slane %v823_v63, 1  ;;  %v855_v7 = vadd.f32 %v854_v0, %v853_v56 }
 0x35c   : > { %v807_v8 = vadd.f32 %v806_v1, %v805_v57  ;;  %v838_v9 = vrot.slane %v837_v2, 1  ;;  %v812_v10 = vrot.slane %v811_v3, 1  ;;  %v843_v11 = vadd.f32 %v842_v4, %v841_v60 }
 0x35d   : > { %v828_v20 = vmul.f32 0.125, %v819_v5  ;;  %v851_v18 = vadd.f32 %v850_v6, %v849_v62  ;;  %v825_v12 = vadd.f32 %v824_v15, %v823_v63  ;;  %v856_v21 = vrot.slane %v855_v7, 1 }
 0x35e   : > { %v826_v26 = vmul.f32 0.125, %v807_v8  ;;  %v839_v24 = vadd.f32 %v838_v9, %v837_v2  ;;  %v813_v13 = vadd.f32 %v812_v10, %v811_v3  ;;  %v844_v14 = vrot.slane %v843_v11, 1 }
 0x35f   : > { %v860_v28 = vmul.f32 0.125, %v851_v18  ;;  %v864_v33 = vmul.f32 %v828_v20, %v828_v20  ;;  %v829_v16 = vmul.f32 0.125, %v825_v12  ;;  %v857_v17 = vadd.f32 %v856_v21, %v855_v7 }
 0x360   : > { %v858_v19 = vmul.f32 0.125, %v839_v24  ;;  %v862_v22 = vmul.f32 %v826_v26, %v826_v26  ;;  %v827_v23 = vmul.f32 0.125, %v813_v13  ;;  %v845_v27 = vadd.f32 %v844_v14, %v843_v11 }
 0x361   : > { %v868_v29 = vsub.f32 %v860_v28, %v864_v33  ;;  %v861_v31 = vmul.f32 0.125, %v857_v17  ;;  %v865_v32 = vmul.f32 %v829_v16, %v829_v16  ;;  %v1707_v17 = vld [vmem:[#allocation5 + $0x100] sm:$0xff]  }
 0x362   : > { %v866_v35 = vsub.f32 %v858_v19, %v862_v22  ;;  %v859_v36 = vmul.f32 0.125, %v845_v27  ;;  %v863_v37 = vmul.f32 %v827_v23, %v827_v23  ;;  %1589 = vmatprep.subr.bf16.mxu0 %v1707_v17  ;;  %v1710_v19 = vld [vmem:[#allocation5 + $0x118] sm:$0xff]   ;;  %v1711_v22 = vld [vmem:[#allocation5 + $0x120] sm:$0xff]   ;;  %v1713_v27 = vld [vmem:[#allocation5 + $0x130] sm:$0xff]  }
 0x363   : > { %v872_v39 = vmax.f32 %v868_v29, 0.0  ;;  %v869_v41 = vsub.f32 %v861_v31, %v865_v32  ;;  %1590 = vmatpush3.bf16.msra.mxu0 %v1707_v17  ;;  %v1714_v29 = vld [vmem:[#allocation5 + $0x138] sm:$0xff]  }
 0x364   : > { %v870_v42 = vmax.f32 %v866_v35, 0.0  ;;  %v867_v43 = vsub.f32 %v859_v36, %v863_v37 }
 0x365   : > { %v876_v44 = vadd.f32 1e-05, %v872_v39  ;;  %v873_v45 = vmax.f32 %v869_v41, 0.0 }
 0x366   : > { %v874_v46 = vadd.f32 1e-05, %v870_v42  ;;  %v871_v47 = vmax.f32 %v867_v43, 0.0 }
 0x367   : > { %1731 = vrsqrt.f32 %v876_v44  ;;  %v877_v48 = vadd.f32 1e-05, %v873_v45 }
 0x368   : > { %1733 = vrsqrt.f32 %v874_v46  ;;  %v875_v49 = vadd.f32 1e-05, %v871_v47 }
 0x369   : > { %1735 = vrsqrt.f32 %v877_v48 }
 0x36a   : > { %1737 = vrsqrt.f32 %v875_v49 }
 0x371   : > { %v1732_v51 = vpop.eup %1731 }
 0x372   : > { %v1734_v52 = vpop.eup %1733  ;;  %v884_v53 = vmul.f32 %v1732_v51, %v703_v50 }
 0x373   : > { %v1736_v54 = vpop.eup %1735  ;;  %v882_v56 = vmul.f32 %v1734_v52, %v703_v50 }
 0x374   : > { %v1738_v57 = vpop.eup %1737  ;;  %v888_v58 = vmul.f32 %v884_v53, %v828_v20  ;;  %v905_v59 = vrot.slane %v884_v53, %v2151_v38  ;;  %v885_v60 = vmul.f32 %v1736_v54, %v703_v50 }
 0x375   : > { %v886_v61 = vmul.f32 %v882_v56, %v826_v26  ;;  %v897_v62 = vrot.slane %v882_v56, %v2151_v38  ;;  %v883_v63 = vmul.f32 %v1738_v57, %v703_v50 }
 0x376   : > { %v892_v0 = vsub.f32 %v704_v55, %v888_v58  ;;  %v889_v1 = vmul.f32 %v885_v60, %v829_v16  ;;  %v909_v2 = vrot.slane %v885_v60, %v2151_v38  ;;  %v912_v6 = vmul.f32 %v2201_v25, %v905_v59 }
 0x377   : > { %v887_v3 = vmul.f32 %v883_v63, %v827_v23  ;;  %v901_v4 = vrot.slane %v883_v63, %v2151_v38  ;;  %v890_v5 = vsub.f32 %v704_v55, %v886_v61  ;;  %v910_v8 = vmul.f32 %v897_v62, %v2206_v30  ;;  %v1712_v23 = vld [vmem:[#allocation5 + $0x128] sm:$0xff]  }
 0x378   : > { %v925_v15 = vrot.slane %v892_v0, %v2151_v38  ;;  %v893_v7 = vsub.f32 %v704_v55, %v889_v1  ;;  %v913_v20 = vmul.f32 %v2211_v34, %v909_v2  ;;  %v1708_v34 = vld [vmem:[#allocation5 + $0x108] sm:$0xff]  }
 0x379   : > { %v891_v9 = vsub.f32 %v704_v55, %v887_v3  ;;  %v917_v10 = vrot.slane %v890_v5, %v2151_v38  ;;  %v911_v12 = vmul.f32 %v901_v4, %v2217_v40  ;;  %1591 = vmatprep.subr.bf16.mxu0 %v1708_v34  ;;  %v1709_v40 = vld [vmem:[#allocation5 + $0x110] sm:$0xff]  }
 0x37a   : > { %v932_v11 = vadd.f32 %v925_v15, %v912_v6  ;;  %v929_v18 = vrot.slane %v893_v7, %v2151_v38  ;;  %1592 = vmatpush3.bf16.msra.mxu0 %v1708_v34 }
 0x37b   : > { %v921_v21 = vrot.slane %v891_v9, %v2151_v38  ;;  %v930_v26 = vadd.f32 %v917_v10, %v910_v8  ;;  %1593 = vmatprep.subr.bf16.mxu0 %v1709_v40 }
 0x37c   : > { %v933_v24 = vadd.f32 %v929_v18, %v913_v20  ;;  %v936_v13 = vmax.f32 %v932_v11, 0.0 }
 0x37d   : > { %v931_v25 = vadd.f32 %v921_v21, %v911_v12  ;;  %v934_v28 = vmax.f32 %v930_v26, 0.0 }
 0x37e   : > { %v937_v14 = vmax.f32 %v933_v24, 0.0  ;;  %1594 = vmatpush3.bf16.msra.mxu0 %v1709_v40 }
 0x37f   : > { %v935_v33 = vmax.f32 %v931_v25, 0.0  ;;  %1595 = vmatprep.subr.bf16.mxu0 %v1710_v19 }
 0x380   : > { %v939_v30 = vpack.c.bf16 %v937_v14, %v936_v13 }
 0x381   : > { %v938_v16 = vpack.c.bf16 %v935_v33, %v934_v28 }
 0x382   : > { %1596 = vmatpush3.bf16.msra.mxu0 %v1710_v19 }
 0x383   : > { %1585 = vmatprep.mubr.bf16.mxu1 %v938_v16  ;;  %1597 = vmatprep.subr.bf16.mxu0 %v1711_v22 }
 0x384   : > { %1586 = vmatmul.mubr.bf16.vlgmr.msra.gmra.mrb[4].mxu1 %v939_v30 }
 0x386   : > { %1598 = vmatpush3.bf16.msra.mxu0 %v1711_v22 }
 0x387   : > { %1599 = vmatprep.subr.bf16.mxu0 %v1712_v23 }
 0x38a   : > { %1600 = vmatpush3.bf16.msra.mxu0 %v1712_v23 }
 0x38b   : > { %1601 = vmatprep.subr.bf16.mxu0 %v1713_v27 }
 0x38e   : > { %1602 = vmatpush3.bf16.msra.mxu0 %v1713_v27 }
 0x38f   : > { %1603 = vmatprep.subr.bf16.mxu0 %v1714_v29 }
 0x392   : > { %1604 = vmatpush3.bf16.msra.mxu0 %v1714_v29 }
 0x457   : > { %v2237_v31 = vpop.f32.mrb[4].mxu1 }
 0x458   : > { %v1068_v32 = vrot.slane %v2237_v31, 4  ;;  %v1086_v35 = vmul.f32 %v2237_v31, %v2237_v31  ;;  %v2242_v36 = vpop.f32.mrb[5].mxu1 }
 0x459   : > { %v1056_v37 = vrot.slane %v2242_v36, 4  ;;  %v1084_v39 = vmul.f32 %v2242_v36, %v2242_v36  ;;  %v2247_v41 = vpop.f32.mrb[6].mxu1 }
 0x45a   : > { %v1069_v42 = vadd.f32 %v2237_v31, %v1068_v32  ;;  %v1100_v43 = vrot.slane %v1086_v35, 4  ;;  %v1074_v44 = vrot.slane %v2247_v41, 4  ;;  %v1087_v45 = vmul.f32 %v2247_v41, %v2247_v41  ;;  %v2253_v46 = vpop.f32.mrb[7].mxu1 }
 0x45b   : > { %v1057_v47 = vadd.f32 %v1056_v37, %v2242_v36  ;;  %v1088_v48 = vrot.slane %v1084_v39, 4  ;;  %v1062_v49 = vrot.slane %v2253_v46, 4  ;;  %v1085_v50 = vmul.f32 %v2253_v46, %v2253_v46 }
 0x45c   : > { %v1070_v51 = vrot.slane %v1069_v42, 2  ;;  %v1101_v52 = vadd.f32 %v1100_v43, %v1086_v35  ;;  %v1075_v53 = vadd.f32 %v2247_v41, %v1074_v44  ;;  %v1106_v54 = vrot.slane %v1087_v45, 4 }
 0x45d   : > { %v1058_v55 = vrot.slane %v1057_v47, 2  ;;  %v1089_v56 = vadd.f32 %v1088_v48, %v1084_v39  ;;  %v1063_v57 = vadd.f32 %v1062_v49, %v2253_v46  ;;  %v1094_v58 = vrot.slane %v1085_v50, 4 }
 0x45e   : > { %v1071_v59 = vadd.f32 %v1070_v51, %v1069_v42  ;;  %v1102_v60 = vrot.slane %v1101_v52, 2  ;;  %v1076_v61 = vrot.slane %v1075_v53, 2  ;;  %v1107_v62 = vadd.f32 %v1106_v54, %v1087_v45 }
 0x45f   : > { %v1059_v63 = vadd.f32 %v1058_v55, %v1057_v47  ;;  %v1090_v0 = vrot.slane %v1089_v56, 2  ;;  %v1064_v1 = vrot.slane %v1063_v57, 2  ;;  %v1095_v2 = vadd.f32 %v1094_v58, %v1085_v50 }
 0x460   : > { %v1072_v3 = vrot.slane %v1071_v59, 1  ;;  %v1103_v4 = vadd.f32 %v1102_v60, %v1101_v52  ;;  %v1077_v5 = vadd.f32 %v1076_v61, %v1075_v53  ;;  %v1108_v6 = vrot.slane %v1107_v62, 2  ;;  %v958_v61 = vld [vmem:[#allocation7 + $0x7] sm:$0x1] }
 0x461   : > { %v1060_v15 = vrot.slane %v1059_v63, 1  ;;  %v1091_v7 = vadd.f32 %v1090_v0, %v1089_v56  ;;  %v1065_v8 = vadd.f32 %v1064_v1, %v1063_v57  ;;  %v1096_v9 = vrot.slane %v1095_v2, 2  ;;  %v957_v56 = vld [vmem:[#allocation7 + $0x6] sm:$0x1] }
 0x462   : > { %v1073_v10 = vadd.f32 %v1072_v3, %v1071_v59  ;;  %v1104_v11 = vrot.slane %v1103_v4, 1  ;;  %v1078_v20 = vrot.slane %v1077_v5, 1  ;;  %v1109_v18 = vadd.f32 %v1108_v6, %v1107_v62 }
 0x463   : > { %v1061_v12 = vadd.f32 %v1060_v15, %v1059_v63  ;;  %v1092_v21 = vrot.slane %v1091_v7, 1  ;;  %v1066_v26 = vrot.slane %v1065_v8, 1  ;;  %v1097_v24 = vadd.f32 %v1096_v9, %v1095_v2 }
 0x464   : > { %v1082_v25 = vmul.f32 0.125, %v1073_v10  ;;  %v1105_v13 = vadd.f32 %v1104_v11, %v1103_v4  ;;  %v1079_v14 = vadd.f32 %v1078_v20, %v1077_v5  ;;  %v1110_v28 = vrot.slane %v1109_v18, 1 }
 0x465   : > { %v1080_v33 = vmul.f32 0.125, %v1061_v12  ;;  %v1093_v30 = vadd.f32 %v1092_v21, %v1091_v7  ;;  %v1067_v16 = vadd.f32 %v1066_v26, %v1065_v8  ;;  %v1098_v17 = vrot.slane %v1097_v24, 1 }
 0x466   : > { %v1114_v34 = vmul.f32 0.125, %v1105_v13  ;;  %v1118_v40 = vmul.f32 %v1082_v25, %v1082_v25  ;;  %v1083_v19 = vmul.f32 0.125, %v1079_v14  ;;  %v1111_v22 = vadd.f32 %v1110_v28, %v1109_v18 }
 0x467   : > { %v1112_v23 = vmul.f32 0.125, %v1093_v30  ;;  %v1116_v27 = vmul.f32 %v1080_v33, %v1080_v33  ;;  %v1081_v29 = vmul.f32 0.125, %v1067_v16  ;;  %v1099_v32 = vadd.f32 %v1098_v17, %v1097_v24 }
 0x468   : > { %v1122_v35 = vsub.f32 %v1114_v34, %v1118_v40  ;;  %v1115_v37 = vmul.f32 0.125, %v1111_v22  ;;  %v1119_v39 = vmul.f32 %v1083_v19, %v1083_v19 }
 0x469   : > { %v1120_v42 = vsub.f32 %v1112_v23, %v1116_v27  ;;  %v1113_v43 = vmul.f32 0.125, %v1099_v32  ;;  %v1117_v44 = vmul.f32 %v1081_v29, %v1081_v29 }
 0x46a   : > { %v1126_v45 = vmax.f32 %v1122_v35, 0.0  ;;  %v1123_v47 = vsub.f32 %v1115_v37, %v1119_v39 }
 0x46b   : > { %v1124_v48 = vmax.f32 %v1120_v42, 0.0  ;;  %v1121_v49 = vsub.f32 %v1113_v43, %v1117_v44 }
 0x46c   : > { %v1130_v50 = vadd.f32 1e-05, %v1126_v45  ;;  %v1127_v51 = vmax.f32 %v1123_v47, 0.0 }
 0x46d   : > { %v1128_v52 = vadd.f32 1e-05, %v1124_v48  ;;  %v1125_v53 = vmax.f32 %v1121_v49, 0.0 }
 0x46e   : > { %1739 = vrsqrt.f32 %v1130_v50  ;;  %v1131_v54 = vadd.f32 1e-05, %v1127_v51 }
 0x46f   : > { %1741 = vrsqrt.f32 %v1128_v52  ;;  %v1129_v55 = vadd.f32 1e-05, %v1125_v53 }
 0x470   : > { %1743 = vrsqrt.f32 %v1131_v54 }
 0x471   : > { %1745 = vrsqrt.f32 %v1129_v55 }
 0x478   : > { %v1740_v57 = vpop.eup %1739 }
 0x479   : > { %v1742_v58 = vpop.eup %1741  ;;  %v1138_v59 = vmul.f32 %v1740_v57, %v957_v56 }
 0x47a   : > { %v1744_v60 = vpop.eup %1743  ;;  %v1136_v62 = vmul.f32 %v1742_v58, %v957_v56 }
 0x47b   : > { %v1746_v63 = vpop.eup %1745  ;;  %v1142_v0 = vmul.f32 %v1138_v59, %v1082_v25  ;;  %v1159_v1 = vrot.slane %v1138_v59, %v2151_v38  ;;  %v1139_v2 = vmul.f32 %v1744_v60, %v957_v56 }
 0x47c   : > { %v1140_v3 = vmul.f32 %v1136_v62, %v1080_v33  ;;  %v1151_v4 = vrot.slane %v1136_v62, %v2151_v38  ;;  %v1137_v5 = vmul.f32 %v1746_v63, %v957_v56 }
 0x47d   : > { %v1146_v6 = vsub.f32 %v958_v61, %v1142_v0  ;;  %v1143_v15 = vmul.f32 %v1139_v2, %v1083_v19  ;;  %v1163_v7 = vrot.slane %v1139_v2, %v2151_v38  ;;  %v1166_v11 = vmul.f32 %v2237_v31, %v1159_v1 }
 0x47e   : > { %v1141_v8 = vmul.f32 %v1137_v5, %v1081_v29  ;;  %v1155_v9 = vrot.slane %v1137_v5, %v2151_v38  ;;  %v1144_v10 = vsub.f32 %v958_v61, %v1140_v3  ;;  %v1164_v12 = vmul.f32 %v1151_v4, %v2242_v36 }
 0x47f   : > { %v1179_v20 = vrot.slane %v1146_v6, %v2151_v38  ;;  %v1147_v18 = vsub.f32 %v958_v61, %v1143_v15  ;;  %v1167_v25 = vmul.f32 %v2247_v41, %v1163_v7  ;;  %v1464_v41 = vld [vmem:[#allocation7 + $0x8] ss:$0 sm:$0xff] }
 0x480   : > { %v1145_v21 = vsub.f32 %v958_v61, %v1141_v8  ;;  %v1171_v26 = vrot.slane %v1144_v10, %v2151_v38  ;;  %v1165_v14 = vmul.f32 %v1155_v9, %v2253_v46 }
 0x481   : > { %v1186_v24 = vadd.f32 %v1179_v20, %v1166_v11  ;;  %v1183_v13 = vrot.slane %v1147_v18, %v2151_v38 }
 0x482   : > { %v1175_v28 = vrot.slane %v1145_v21, %v2151_v38  ;;  %v1184_v33 = vadd.f32 %v1171_v26, %v1164_v12 }
 0x483   : > { %v1187_v31 = vadd.f32 %v1183_v13, %v1167_v25  ;;  %v1190_v16 = vmax.f32 %v1186_v24, 0.0 }
 0x484   : > { %v1185_v30 = vadd.f32 %v1175_v28, %v1165_v14  ;;  %v1188_v36 = vmax.f32 %v1184_v33, 0.0 }
 0x485   : > { %v1191_v17 = vmax.f32 %v1187_v31, 0.0 }
 0x486   : > { %v1189_v34 = vmax.f32 %v1185_v30, 0.0 }
 0x487   : > { %v1193_v40 = vpack.c.bf16 %v1191_v17, %v1190_v16 }
 0x488   : > { %v1192_v19 = vpack.c.bf16 %v1189_v34, %v1188_v36 }
 0x48a   : > { %1605 = vmatprep.mubr.bf16.mxu0 %v1192_v19 }
 0x48b   : > { %1606 = vmatmul.mubr.bf16.vlgmr.msra.gmra.mrb[8].mxu0 %v1193_v40 }
 0x55e   : > { %v1607_v22 = vpop.f32.mrb[8].mxu0 }
 0x55f   : > { %v1307_v38 = vadd.f32 %v1607_v22, %v1464_v41  ;;  %v1298_v46 = vpop.f32.mrb[9].mxu0 }
 0x560   : > { %v1299_v23 = vadd.f32 %v1464_v41, %v1298_v46  ;;  %v1608_v27 = vpop.f32.mrb[10].mxu0 }
 0x561   : > { %1316 = vst.msk [vmem:[%s217_s18 + $0x10] sm:$0xff] %vm1313_vm1, %v1307_v38  ;;  %v1310_v29 = vadd.f32 %v1608_v27, %v1464_v41  ;;  %v1301_v32 = vpop.f32.mrb[11].mxu0 }
 0x562   : > { %1314 = vst.msk [vmem:[%s217_s18] sm:$0xff] %vm1313_vm1, %v1299_v23  ;;  %v1302_v35 = vadd.f32 %v1464_v41, %v1301_v32 }
 0x563   : > { %1317 = vst.msk [vmem:[%s217_s18 + $0x18] sm:$0xff] %vm1313_vm1, %v1310_v29 }
 0x564   : > { %1315 = vst.msk [vmem:[%s217_s18 + $0x8] sm:$0xff] %vm1313_vm1, %v1302_v35 }
 0x565   : > { %1846 = shalt.err (!%p1843_p2)
}
 0x566   : > { %s1847_s10 = scalar_lea.hbm %s2281_s27, 512  ;;  %s1851_s26 = scalar_lea.hbm %s2328_s3, 1024 }
 0x567   : > { %p1848_p13 = scmp.ne.s32.totalorder %s2281_s27, %s1847_s10  ;;  %p1852_p4 = scmp.lt.u32.totalorder %s2281_s27, %s2328_s3 }
 0x568   : > { %p1853_p7 = scmp.lt.u32.totalorder %s1851_s26, %s1847_s10  ;;  %p1855_p11 = scmp.lt.u32.totalorder %s1847_s10, %s2281_s27 }
 0x569   : > { %p1849_p6 = pnand %p1848_p13, %p2342_p0 }
 0x56a   : > { %p1854_p8 = por %p1853_p7, %p1852_p4 }
 0x56b   : > { %p1850_p10 = pneg %p1849_p6 }
 0x56c   : > { %p1856_p1 = por %p1855_p11, %p1854_p8 }
 0x56e   : > { %p1857_p3 = pnand %p1856_p1, %p1850_p10 }
 0x570   : > { %1860 = shalt.err (!%p1857_p3)
}
 0x571   : > { %s1913_s28 = smov 128   ;;  %s1914_s18 = smov 8  }
 0x572   : > { %1619 = dma.vmem_to_hbm [thread:$0]  (%p2342_p0), %s2276_s20, 512, %s2281_s27, %s1319_s16, %s1913_s28, %s1913_s28, %s1914_s18  }
 0x573 PF: > { %s1347_s29 = sand.u32 1, %s1891_s12   ;;  %p2343_p5 = scmp.ne.s32.totalorder %s2333_s19, 0 }
 0x574   : > { %p2344_p9 = scmp.ge.s32.totalorder %s1903_s15, 2  ;;  %s1348_s30 = scalar_lea.sflag [#allocation4], %s1347_s29 }
 0x576   : > { %p1633_p12 = pnand %p2344_p9, %p2343_p5 }
 0x578   : > { %1886 = dma.done.wait (!%p1633_p12), %s1348_s30, 512  }
 0x579   : > { %1888 = vsyncadd (!%p1633_p12), %s1348_s30, 4294966784  ;;  %p17_p2 = scmp.ge.s32.totalorder %s2048_s6, 4   ;;  %s2345_s12 = smov %s1895_s13 }
 0x57a   : > { %s2346_s13 = smov %s1899_s14  ;;  %s2347_s14 = smov %s2057_s9 }
 0x57b   : > { %s2348_s15 = smov %s2048_s6  ;;  %19 = sbr.rel (!%p17_p2) target bundleno = 6 (0x6), region = 89 }
 0x582   :  { %1353 = vsyncpa [#allocation3], 1 }
 0x583   :  { %1355 = vsyncpa [#allocation3 + $0x1], 1 }
 0x584   :  { %1356 = vsyncpa [#allocation6], 1 }
 0x585   :  { %1357 = vsyncpa [#allocation4], 1 }
 0x586   :  { %1359 = vsyncpa [#allocation4 + $0x1], 1 }

</bundles_post_ra>
